<compile_context>
chip_gen: v6e
topology: v6e:2x2x1
jax: 0.10.0
libtpu: 0.0.40
codegen_flags: <defaults>
</compile_context>

<pallas_src>
import math

import jax
import jax.numpy as jnp
from jax.experimental import pallas as pl
from jax.experimental.pallas import tpu as pltpu

# ---------------- model sizes (small, deterministic) ----------------
BATCH = 2      # batch size
STEPS = 8      # decoder sequence length (num_steps)
VOCAB = 32     # vocab_size
EMBED = 16     # embed_size
HIDDEN = 32    # num_hiddens
LAYERS = 2     # num_layers
VPAD = 128     # lane-dense padding of the vocab/logit dimension


def _sigmoid(x):
    # explicit form (exp + divide) — guaranteed Mosaic lowering, EUP-friendly
    return 1.0 / (1.0 + jnp.exp(-x))


def seq2seq_decoder_kernel(
    ids_ref,       # (T*B, 1) int32, time-major flattened token ids (row = t*B + b)
    emb_ref,       # (V, E)    embedding table
    state_ref,     # (L, B, H) initial GRU hidden state (from the encoder)
    wih0_ref,      # (E+H, 3H) layer-0 input->gates weight (pre-transposed)
    whh0_ref,      # (H,  3H)  layer-0 hidden->gates weight (pre-transposed)
    bih0_ref,      # (1, 3H)
    bhh0_ref,      # (1, 3H)
    wih1_ref,      # (H, 3H)   layer-1 input->gates weight (pre-transposed)
    whh1_ref,      # (H, 3H)
    bih1_ref,      # (1, 3H)
    bhh1_ref,      # (1, 3H)
    wdense_ref,    # (H, VPAD) dense weight (pre-transposed, zero-padded lanes)
    bdense_ref,    # (1, VPAD)
    out_ref,       # (T*B, VPAD) logits, time-major flattened, lane-dense
    newstate_ref,  # (L, B, H) final GRU hidden state
):
    TB = ids_ref.shape[0]
    V, E = emb_ref.shape
    L, B, H = state_ref.shape
    T = TB // B

    # ---- embedding lookup as ONE one-hot MXU matmul (exact gather) ----
    ids = ids_ref[...]                                                 # (T*B, 1)
    vocab_iota = jax.lax.broadcasted_iota(jnp.int32, (TB, V), 1)       # (T*B, V)
    onehot = (vocab_iota == ids).astype(jnp.float32)
    emb = jnp.dot(onehot, emb_ref[...],
                  preferred_element_type=jnp.float32)                  # (T*B, E)

    # ---- context = last-layer encoder hidden, repeated over every time step ----
    ctx = jnp.concatenate([state_ref[L - 1]] * T, axis=0)              # (T*B, H)
    x_cat = jnp.concatenate([emb, ctx], axis=1)                        # (T*B, E+H)

    def gru_layer(x_all, h0, wih, whh, bih, bhh):
        # Fused input projection for ALL time steps in a single MXU pass.
        gx_all = jnp.dot(x_all, wih,
                         preferred_element_type=jnp.float32) + bih     # (T*B, 3H)
        h = h0                                                         # (B, H)
        outs = []
        for t in range(T):                                             # sequential recurrence
            gx = gx_all[t * B:(t + 1) * B]                             # (B, 3H)
            gh = jnp.dot(h, whh,
                         preferred_element_type=jnp.float32) + bhh     # (B, 3H)
            r = _sigmoid(gx[:, 0:H] + gh[:, 0:H])
            z = _sigmoid(gx[:, H:2 * H] + gh[:, H:2 * H])
            n = jnp.tanh(gx[:, 2 * H:3 * H] + r * gh[:, 2 * H:3 * H])
            h = (1.0 - z) * n + z * h
            outs.append(h)
        return jnp.concatenate(outs, axis=0), h                        # (T*B, H), (B, H)

    # TODO(synk): inter-layer GRU dropout omitted (module default dropout=0 / eval mode).
    y0, h0_final = gru_layer(x_cat, state_ref[0],
                             wih0_ref[...], whh0_ref[...], bih0_ref[...], bhh0_ref[...])
    y1, h1_final = gru_layer(y0, state_ref[1],
                             wih1_ref[...], whh1_ref[...], bih1_ref[...], bhh1_ref[...])

    newstate_ref[0] = h0_final
    newstate_ref[1] = h1_final

    # ---- dense output projection; single lane-dense (128-wide) store ----
    logits = jnp.dot(y1, wdense_ref[...],
                     preferred_element_type=jnp.float32) + bdense_ref[...]
    out_ref[...] = logits.astype(out_ref.dtype)


def seq2seq_decoder_forward(X, state, params):
    """Pallas forward of Seq2SeqDecoder: returns (output (B,T,V), new_state (L,B,H))."""
    Bb, T = X.shape
    L, _, H = state.shape
    V, E = params["embedding"].shape

    # time-major flattened token ids, row index = t*B + b (matches permute(1,0,2))
    ids_flat = jnp.transpose(X, (1, 0)).astype(jnp.int32).reshape(T * Bb, 1)

    # pre-transpose weights to (in, out) so the kernel never transposes;
    # pad the dense projection to a lane-dense 128-wide output.
    wih0 = jnp.transpose(params["w_ih0"])                                  # (E+H, 3H)
    whh0 = jnp.transpose(params["w_hh0"])                                  # (H, 3H)
    wih1 = jnp.transpose(params["w_ih1"])                                  # (H, 3H)
    whh1 = jnp.transpose(params["w_hh1"])                                  # (H, 3H)
    bih0 = params["b_ih0"][None, :]
    bhh0 = params["b_hh0"][None, :]
    bih1 = params["b_ih1"][None, :]
    bhh1 = params["b_hh1"][None, :]
    wdense = jnp.pad(jnp.transpose(params["w_dense"]), ((0, 0), (0, VPAD - V)))  # (H, VPAD)
    bdense = jnp.pad(params["b_dense"][None, :], ((0, 0), (0, VPAD - V)))        # (1, VPAD)

    def vmem():
        return pl.BlockSpec(memory_space=pltpu.MemorySpace.VMEM)

    out_flat, new_state = pl.pallas_call(
        seq2seq_decoder_kernel,
        out_shape=(
            jax.ShapeDtypeStruct((T * Bb, VPAD), jnp.float32),
            jax.ShapeDtypeStruct((L, Bb, H), jnp.float32),
        ),
        in_specs=[vmem() for _ in range(13)],
        out_specs=(vmem(), vmem()),
    )(ids_flat, params["embedding"], state,
      wih0, whh0, bih0, bhh0, wih1, whh1, bih1, bhh1, wdense, bdense)

    # drop the padded lanes and restore (batch, num_steps, vocab) layout
    output = out_flat.reshape(T, Bb, VPAD)[:, :, :V]
    output = jnp.transpose(output, (1, 0, 2))
    return output, new_state


def reference(X, state, params):
    """Pure-JAX re-implementation of the PyTorch Seq2SeqDecoder forward."""
    Bb, T = X.shape
    L, _, H = state.shape
    emb = params["embedding"][X]                                   # (B, T, E)
    x = jnp.transpose(emb, (1, 0, 2))                              # (T, B, E)
    ctx = jnp.broadcast_to(state[-1][None, :, :], (T, Bb, H))      # (T, B, H)
    layer_in = jnp.concatenate([x, ctx], axis=2)                   # (T, B, E+H)

    finals = []
    for l in range(L):
        wih, whh = params[f"w_ih{l}"], params[f"w_hh{l}"]
        bih, bhh = params[f"b_ih{l}"], params[f"b_hh{l}"]
        h = state[l]
        outs = []
        for t in range(T):
            gx = layer_in[t] @ wih.T + bih
            gh = h @ whh.T + bhh
            r = jax.nn.sigmoid(gx[:, 0:H] + gh[:, 0:H])
            z = jax.nn.sigmoid(gx[:, H:2 * H] + gh[:, H:2 * H])
            n = jnp.tanh(gx[:, 2 * H:3 * H] + r * gh[:, 2 * H:3 * H])
            h = (1.0 - z) * n + z * h
            outs.append(h)
        layer_in = jnp.stack(outs, axis=0)                         # (T, B, H)
        finals.append(h)

    logits = layer_in @ params["w_dense"].T + params["b_dense"]    # (T, B, V)
    return jnp.transpose(logits, (1, 0, 2)), jnp.stack(finals, axis=0)


if __name__ == "__main__":
    key = jax.random.PRNGKey(0)
    ks = jax.random.split(key, 14)

    # deterministic inputs: token ids + encoder-produced hidden state
    X = jax.random.randint(ks[0], (BATCH, STEPS), 0, VOCAB, dtype=jnp.int32)
    enc_state = jax.random.normal(ks[1], (LAYERS, BATCH, HIDDEN), dtype=jnp.float32)

    params = {
        "embedding": jax.random.normal(ks[2], (VOCAB, EMBED)) * 0.5,
        "w_ih0": jax.random.normal(ks[3], (3 * HIDDEN, EMBED + HIDDEN)) * (1.0 / math.sqrt(EMBED + HIDDEN)),
        "w_hh0": jax.random.normal(ks[4], (3 * HIDDEN, HIDDEN)) * (1.0 / math.sqrt(HIDDEN)),
        "b_ih0": jax.random.normal(ks[5], (3 * HIDDEN,)) * 0.1,
        "b_hh0": jax.random.normal(ks[6], (3 * HIDDEN,)) * 0.1,
        "w_ih1": jax.random.normal(ks[7], (3 * HIDDEN, HIDDEN)) * (1.0 / math.sqrt(HIDDEN)),
        "w_hh1": jax.random.normal(ks[8], (3 * HIDDEN, HIDDEN)) * (1.0 / math.sqrt(HIDDEN)),
        "b_ih1": jax.random.normal(ks[9], (3 * HIDDEN,)) * 0.1,
        "b_hh1": jax.random.normal(ks[10], (3 * HIDDEN,)) * 0.1,
        "w_dense": jax.random.normal(ks[11], (VOCAB, HIDDEN)) * (1.0 / math.sqrt(HIDDEN)),
        "b_dense": jax.random.normal(ks[12], (VOCAB,)) * 0.1,
    }
    params = {k: v.astype(jnp.float32) for k, v in params.items()}

    out, new_state = seq2seq_decoder_forward(X, enc_state, params)
    out = jax.block_until_ready(out)
    new_state = jax.block_until_ready(new_state)

    ref_out, ref_state = reference(X, enc_state, params)

    assert out.shape == (BATCH, STEPS, VOCAB)
    assert new_state.shape == (LAYERS, BATCH, HIDDEN)
    assert jnp.allclose(out, ref_out, atol=2e-4, rtol=2e-4), "output mismatch vs reference"
    assert jnp.allclose(new_state, ref_state, atol=2e-4, rtol=2e-4), "state mismatch vs reference"

    print("KERNEL_OK")
</pallas_src>

<mosaic_0001>
module attributes {stable_mosaic.version = 11 : i64} {
  func.func @seq2seq_decoder_kernel(%arg0: memref<16x1xi32, #tpu.memory_space<vmem>>, %arg1: memref<32x16xf32, #tpu.memory_space<vmem>>, %arg2: memref<2x2x32xf32, #tpu.memory_space<vmem>>, %arg3: memref<48x96xf32, #tpu.memory_space<vmem>>, %arg4: memref<32x96xf32, #tpu.memory_space<vmem>>, %arg5: memref<1x96xf32, #tpu.memory_space<vmem>>, %arg6: memref<1x96xf32, #tpu.memory_space<vmem>>, %arg7: memref<32x96xf32, #tpu.memory_space<vmem>>, %arg8: memref<32x96xf32, #tpu.memory_space<vmem>>, %arg9: memref<1x96xf32, #tpu.memory_space<vmem>>, %arg10: memref<1x96xf32, #tpu.memory_space<vmem>>, %arg11: memref<32x128xf32, #tpu.memory_space<vmem>>, %arg12: memref<1x128xf32, #tpu.memory_space<vmem>>, %arg13: memref<16x128xf32, #tpu.memory_space<vmem>>, %arg14: memref<2x2x32xf32, #tpu.memory_space<vmem>>) attributes {dimension_semantics = [], scalar_prefetch = 0 : i64, scratch_operands = 0 : i64, tpu.core_type = #tpu.core_type<tc>} {
    %c0 = arith.constant 0 : index
    %c0_0 = arith.constant 0 : index
    %0 = vector.load %arg0[%c0, %c0_0] : memref<16x1xi32, #tpu.memory_space<vmem>>, vector<16x1xi32>
    %1 = tpu.iota {dimensions = array<i32: 1>} : vector<16x32xi32>
    %2 = vector.broadcast %0 : vector<16x1xi32> to vector<16x32xi32>
    %3 = arith.cmpi eq, %1, %2 : vector<16x32xi32>
    %4 = arith.extui %3 : vector<16x32xi1> to vector<16x32xi32>
    %5 = arith.sitofp %4 : vector<16x32xi32> to vector<16x32xf32>
    %c0_1 = arith.constant 0 : index
    %c0_2 = arith.constant 0 : index
    %6 = vector.load %arg1[%c0_1, %c0_2] : memref<32x16xf32, #tpu.memory_space<vmem>>, vector<32x16xf32>
    %cst = arith.constant dense<0.000000e+00> : vector<16x16xf32>
    %7 = tpu.matmul %5, %6, %cst {dimension_numbers = #tpu.dot_dimension_numbers<[1], [0], [0], [1], [0, 0, 1, 1], [], []>} : vector<16x32xf32>, vector<32x16xf32>, vector<16x16xf32> -> vector<16x16xf32>
    %c1 = arith.constant 1 : index
    %c0_3 = arith.constant 0 : index
    %c0_4 = arith.constant 0 : index
    %8 = vector.load %arg2[%c1, %c0_3, %c0_4] : memref<2x2x32xf32, #tpu.memory_space<vmem>>, vector<1x2x32xf32>
    %9 = vector.shape_cast %8 : vector<1x2x32xf32> to vector<2x32xf32>
    %10 = tpu.concatenate %9, %9, %9, %9, %9, %9, %9, %9 in 0 : vector<2x32xf32>, vector<2x32xf32>, vector<2x32xf32>, vector<2x32xf32>, vector<2x32xf32>, vector<2x32xf32>, vector<2x32xf32>, vector<2x32xf32> -> vector<16x32xf32>
    %11 = tpu.concatenate %7, %10 in 1 : vector<16x16xf32>, vector<16x32xf32> -> vector<16x48xf32>
    %c0_5 = arith.constant 0 : index
    %c0_6 = arith.constant 0 : index
    %c0_7 = arith.constant 0 : index
    %12 = vector.load %arg2[%c0_5, %c0_6, %c0_7] : memref<2x2x32xf32, #tpu.memory_space<vmem>>, vector<1x2x32xf32>
    %13 = vector.shape_cast %12 : vector<1x2x32xf32> to vector<2x32xf32>
    %c0_8 = arith.constant 0 : index
    %c0_9 = arith.constant 0 : index
    %14 = vector.load %arg3[%c0_8, %c0_9] : memref<48x96xf32, #tpu.memory_space<vmem>>, vector<48x96xf32>
    %c0_10 = arith.constant 0 : index
    %c0_11 = arith.constant 0 : index
    %15 = vector.load %arg4[%c0_10, %c0_11] : memref<32x96xf32, #tpu.memory_space<vmem>>, vector<32x96xf32>
    %c0_12 = arith.constant 0 : index
    %c0_13 = arith.constant 0 : index
    %16 = vector.load %arg5[%c0_12, %c0_13] : memref<1x96xf32, #tpu.memory_space<vmem>>, vector<1x96xf32>
    %c0_14 = arith.constant 0 : index
    %c0_15 = arith.constant 0 : index
    %17 = vector.load %arg6[%c0_14, %c0_15] : memref<1x96xf32, #tpu.memory_space<vmem>>, vector<1x96xf32>
    %cst_16 = arith.constant dense<0.000000e+00> : vector<16x96xf32>
    %18 = tpu.matmul %11, %14, %cst_16 {dimension_numbers = #tpu.dot_dimension_numbers<[1], [0], [0], [1], [0, 0, 1, 1], [], []>} : vector<16x48xf32>, vector<48x96xf32>, vector<16x96xf32> -> vector<16x96xf32>
    %19 = vector.broadcast %16 : vector<1x96xf32> to vector<16x96xf32>
    %20 = arith.addf %18, %19 : vector<16x96xf32>
    %21 = vector.extract_strided_slice %20 {offsets = [0, 0], sizes = [2, 96], strides = [1, 1]} : vector<16x96xf32> to vector<2x96xf32>
    %cst_17 = arith.constant dense<0.000000e+00> : vector<2x96xf32>
    %22 = tpu.matmul %13, %15, %cst_17 {dimension_numbers = #tpu.dot_dimension_numbers<[1], [0], [0], [1], [0, 0, 1, 1], [], []>} : vector<2x32xf32>, vector<32x96xf32>, vector<2x96xf32> -> vector<2x96xf32>
    %23 = vector.broadcast %17 : vector<1x96xf32> to vector<2x96xf32>
    %24 = arith.addf %22, %23 : vector<2x96xf32>
    %25 = vector.extract_strided_slice %21 {offsets = [0, 0], sizes = [2, 32], strides = [1, 1]} : vector<2x96xf32> to vector<2x32xf32>
    %26 = vector.extract_strided_slice %24 {offsets = [0, 0], sizes = [2, 32], strides = [1, 1]} : vector<2x96xf32> to vector<2x32xf32>
    %27 = arith.addf %25, %26 : vector<2x32xf32>
    %cst_18 = arith.constant 0.000000e+00 : f32
    %28 = vector.broadcast %cst_18 : f32 to vector<2x32xf32>
    %29 = arith.subf %28, %27 : vector<2x32xf32>
    %30 = math.exp %29 : vector<2x32xf32>
    %cst_19 = arith.constant 1.000000e+00 : f32
    %31 = vector.broadcast %cst_19 : f32 to vector<2x32xf32>
    %32 = arith.addf %31, %30 : vector<2x32xf32>
    %cst_20 = arith.constant 1.000000e+00 : f32
    %33 = vector.broadcast %cst_20 : f32 to vector<2x32xf32>
    %34 = arith.divf %33, %32 : vector<2x32xf32>
    %35 = vector.extract_strided_slice %21 {offsets = [0, 32], sizes = [2, 32], strides = [1, 1]} : vector<2x96xf32> to vector<2x32xf32>
    %36 = vector.extract_strided_slice %24 {offsets = [0, 32], sizes = [2, 32], strides = [1, 1]} : vector<2x96xf32> to vector<2x32xf32>
    %37 = arith.addf %35, %36 : vector<2x32xf32>
    %cst_21 = arith.constant 0.000000e+00 : f32
    %38 = vector.broadcast %cst_21 : f32 to vector<2x32xf32>
    %39 = arith.subf %38, %37 : vector<2x32xf32>
    %40 = math.exp %39 : vector<2x32xf32>
    %cst_22 = arith.constant 1.000000e+00 : f32
    %41 = vector.broadcast %cst_22 : f32 to vector<2x32xf32>
    %42 = arith.addf %41, %40 : vector<2x32xf32>
    %cst_23 = arith.constant 1.000000e+00 : f32
    %43 = vector.broadcast %cst_23 : f32 to vector<2x32xf32>
    %44 = arith.divf %43, %42 : vector<2x32xf32>
    %45 = vector.extract_strided_slice %21 {offsets = [0, 64], sizes = [2, 32], strides = [1, 1]} : vector<2x96xf32> to vector<2x32xf32>
    %46 = vector.extract_strided_slice %24 {offsets = [0, 64], sizes = [2, 32], strides = [1, 1]} : vector<2x96xf32> to vector<2x32xf32>
    %47 = arith.mulf %34, %46 : vector<2x32xf32>
    %48 = arith.addf %45, %47 : vector<2x32xf32>
    %49 = math.tanh %48 : vector<2x32xf32>
    %cst_24 = arith.constant 1.000000e+00 : f32
    %50 = vector.broadcast %cst_24 : f32 to vector<2x32xf32>
    %51 = arith.subf %50, %44 : vector<2x32xf32>
    %52 = arith.mulf %51, %49 : vector<2x32xf32>
    %53 = arith.mulf %44, %13 : vector<2x32xf32>
    %54 = arith.addf %52, %53 : vector<2x32xf32>
    %55 = vector.extract_strided_slice %20 {offsets = [2, 0], sizes = [2, 96], strides = [1, 1]} : vector<16x96xf32> to vector<2x96xf32>
    %cst_25 = arith.constant dense<0.000000e+00> : vector<2x96xf32>
    %56 = tpu.matmul %54, %15, %cst_25 {dimension_numbers = #tpu.dot_dimension_numbers<[1], [0], [0], [1], [0, 0, 1, 1], [], []>} : vector<2x32xf32>, vector<32x96xf32>, vector<2x96xf32> -> vector<2x96xf32>
    %57 = vector.broadcast %17 : vector<1x96xf32> to vector<2x96xf32>
    %58 = arith.addf %56, %57 : vector<2x96xf32>
    %59 = vector.extract_strided_slice %55 {offsets = [0, 0], sizes = [2, 32], strides = [1, 1]} : vector<2x96xf32> to vector<2x32xf32>
    %60 = vector.extract_strided_slice %58 {offsets = [0, 0], sizes = [2, 32], strides = [1, 1]} : vector<2x96xf32> to vector<2x32xf32>
    %61 = arith.addf %59, %60 : vector<2x32xf32>
    %cst_26 = arith.constant 0.000000e+00 : f32
    %62 = vector.broadcast %cst_26 : f32 to vector<2x32xf32>
    %63 = arith.subf %62, %61 : vector<2x32xf32>
    %64 = math.exp %63 : vector<2x32xf32>
    %cst_27 = arith.constant 1.000000e+00 : f32
    %65 = vector.broadcast %cst_27 : f32 to vector<2x32xf32>
    %66 = arith.addf %65, %64 : vector<2x32xf32>
    %cst_28 = arith.constant 1.000000e+00 : f32
    %67 = vector.broadcast %cst_28 : f32 to vector<2x32xf32>
    %68 = arith.divf %67, %66 : vector<2x32xf32>
    %69 = vector.extract_strided_slice %55 {offsets = [0, 32], sizes = [2, 32], strides = [1, 1]} : vector<2x96xf32> to vector<2x32xf32>
    %70 = vector.extract_strided_slice %58 {offsets = [0, 32], sizes = [2, 32], strides = [1, 1]} : vector<2x96xf32> to vector<2x32xf32>
    %71 = arith.addf %69, %70 : vector<2x32xf32>
    %cst_29 = arith.constant 0.000000e+00 : f32
    %72 = vector.broadcast %cst_29 : f32 to vector<2x32xf32>
    %73 = arith.subf %72, %71 : vector<2x32xf32>
    %74 = math.exp %73 : vector<2x32xf32>
    %cst_30 = arith.constant 1.000000e+00 : f32
    %75 = vector.broadcast %cst_30 : f32 to vector<2x32xf32>
    %76 = arith.addf %75, %74 : vector<2x32xf32>
    %cst_31 = arith.constant 1.000000e+00 : f32
    %77 = vector.broadcast %cst_31 : f32 to vector<2x32xf32>
    %78 = arith.divf %77, %76 : vector<2x32xf32>
    %79 = vector.extract_strided_slice %55 {offsets = [0, 64], sizes = [2, 32], strides = [1, 1]} : vector<2x96xf32> to vector<2x32xf32>
    %80 = vector.extract_strided_slice %58 {offsets = [0, 64], sizes = [2, 32], strides = [1, 1]} : vector<2x96xf32> to vector<2x32xf32>
    %81 = arith.mulf %68, %80 : vector<2x32xf32>
    %82 = arith.addf %79, %81 : vector<2x32xf32>
    %83 = math.tanh %82 : vector<2x32xf32>
    %cst_32 = arith.constant 1.000000e+00 : f32
    %84 = vector.broadcast %cst_32 : f32 to vector<2x32xf32>
    %85 = arith.subf %84, %78 : vector<2x32xf32>
    %86 = arith.mulf %85, %83 : vector<2x32xf32>
    %87 = arith.mulf %78, %54 : vector<2x32xf32>
    %88 = arith.addf %86, %87 : vector<2x32xf32>
    %89 = vector.extract_strided_slice %20 {offsets = [4, 0], sizes = [2, 96], strides = [1, 1]} : vector<16x96xf32> to vector<2x96xf32>
    %cst_33 = arith.constant dense<0.000000e+00> : vector<2x96xf32>
    %90 = tpu.matmul %88, %15, %cst_33 {dimension_numbers = #tpu.dot_dimension_numbers<[1], [0], [0], [1], [0, 0, 1, 1], [], []>} : vector<2x32xf32>, vector<32x96xf32>, vector<2x96xf32> -> vector<2x96xf32>
    %91 = vector.broadcast %17 : vector<1x96xf32> to vector<2x96xf32>
    %92 = arith.addf %90, %91 : vector<2x96xf32>
    %93 = vector.extract_strided_slice %89 {offsets = [0, 0], sizes = [2, 32], strides = [1, 1]} : vector<2x96xf32> to vector<2x32xf32>
    %94 = vector.extract_strided_slice %92 {offsets = [0, 0], sizes = [2, 32], strides = [1, 1]} : vector<2x96xf32> to vector<2x32xf32>
    %95 = arith.addf %93, %94 : vector<2x32xf32>
    %cst_34 = arith.constant 0.000000e+00 : f32
    %96 = vector.broadcast %cst_34 : f32 to vector<2x32xf32>
    %97 = arith.subf %96, %95 : vector<2x32xf32>
    %98 = math.exp %97 : vector<2x32xf32>
    %cst_35 = arith.constant 1.000000e+00 : f32
    %99 = vector.broadcast %cst_35 : f32 to vector<2x32xf32>
    %100 = arith.addf %99, %98 : vector<2x32xf32>
    %cst_36 = arith.constant 1.000000e+00 : f32
    %101 = vector.broadcast %cst_36 : f32 to vector<2x32xf32>
    %102 = arith.divf %101, %100 : vector<2x32xf32>
    %103 = vector.extract_strided_slice %89 {offsets = [0, 32], sizes = [2, 32], strides = [1, 1]} : vector<2x96xf32> to vector<2x32xf32>
    %104 = vector.extract_strided_slice %92 {offsets = [0, 32], sizes = [2, 32], strides = [1, 1]} : vector<2x96xf32> to vector<2x32xf32>
    %105 = arith.addf %103, %104 : vector<2x32xf32>
    %cst_37 = arith.constant 0.000000e+00 : f32
    %106 = vector.broadcast %cst_37 : f32 to vector<2x32xf32>
    %107 = arith.subf %106, %105 : vector<2x32xf32>
    %108 = math.exp %107 : vector<2x32xf32>
    %cst_38 = arith.constant 1.000000e+00 : f32
    %109 = vector.broadcast %cst_38 : f32 to vector<2x32xf32>
    %110 = arith.addf %109, %108 : vector<2x32xf32>
    %cst_39 = arith.constant 1.000000e+00 : f32
    %111 = vector.broadcast %cst_39 : f32 to vector<2x32xf32>
    %112 = arith.divf %111, %110 : vector<2x32xf32>
    %113 = vector.extract_strided_slice %89 {offsets = [0, 64], sizes = [2, 32], strides = [1, 1]} : vector<2x96xf32> to vector<2x32xf32>
    %114 = vector.extract_strided_slice %92 {offsets = [0, 64], sizes = [2, 32], strides = [1, 1]} : vector<2x96xf32> to vector<2x32xf32>
    %115 = arith.mulf %102, %114 : vector<2x32xf32>
    %116 = arith.addf %113, %115 : vector<2x32xf32>
    %117 = math.tanh %116 : vector<2x32xf32>
    %cst_40 = arith.constant 1.000000e+00 : f32
    %118 = vector.broadcast %cst_40 : f32 to vector<2x32xf32>
    %119 = arith.subf %118, %112 : vector<2x32xf32>
    %120 = arith.mulf %119, %117 : vector<2x32xf32>
    %121 = arith.mulf %112, %88 : vector<2x32xf32>
    %122 = arith.addf %120, %121 : vector<2x32xf32>
    %123 = vector.extract_strided_slice %20 {offsets = [6, 0], sizes = [2, 96], strides = [1, 1]} : vector<16x96xf32> to vector<2x96xf32>
    %cst_41 = arith.constant dense<0.000000e+00> : vector<2x96xf32>
    %124 = tpu.matmul %122, %15, %cst_41 {dimension_numbers = #tpu.dot_dimension_numbers<[1], [0], [0], [1], [0, 0, 1, 1], [], []>} : vector<2x32xf32>, vector<32x96xf32>, vector<2x96xf32> -> vector<2x96xf32>
    %125 = vector.broadcast %17 : vector<1x96xf32> to vector<2x96xf32>
    %126 = arith.addf %124, %125 : vector<2x96xf32>
    %127 = vector.extract_strided_slice %123 {offsets = [0, 0], sizes = [2, 32], strides = [1, 1]} : vector<2x96xf32> to vector<2x32xf32>
    %128 = vector.extract_strided_slice %126 {offsets = [0, 0], sizes = [2, 32], strides = [1, 1]} : vector<2x96xf32> to vector<2x32xf32>
    %129 = arith.addf %127, %128 : vector<2x32xf32>
    %cst_42 = arith.constant 0.000000e+00 : f32
    %130 = vector.broadcast %cst_42 : f32 to vector<2x32xf32>
    %131 = arith.subf %130, %129 : vector<2x32xf32>
    %132 = math.exp %131 : vector<2x32xf32>
    %cst_43 = arith.constant 1.000000e+00 : f32
    %133 = vector.broadcast %cst_43 : f32 to vector<2x32xf32>
    %134 = arith.addf %133, %132 : vector<2x32xf32>
    %cst_44 = arith.constant 1.000000e+00 : f32
    %135 = vector.broadcast %cst_44 : f32 to vector<2x32xf32>
    %136 = arith.divf %135, %134 : vector<2x32xf32>
    %137 = vector.extract_strided_slice %123 {offsets = [0, 32], sizes = [2, 32], strides = [1, 1]} : vector<2x96xf32> to vector<2x32xf32>
    %138 = vector.extract_strided_slice %126 {offsets = [0, 32], sizes = [2, 32], strides = [1, 1]} : vector<2x96xf32> to vector<2x32xf32>
    %139 = arith.addf %137, %138 : vector<2x32xf32>
    %cst_45 = arith.constant 0.000000e+00 : f32
    %140 = vector.broadcast %cst_45 : f32 to vector<2x32xf32>
    %141 = arith.subf %140, %139 : vector<2x32xf32>
    %142 = math.exp %141 : vector<2x32xf32>
    %cst_46 = arith.constant 1.000000e+00 : f32
    %143 = vector.broadcast %cst_46 : f32 to vector<2x32xf32>
    %144 = arith.addf %143, %142 : vector<2x32xf32>
    %cst_47 = arith.constant 1.000000e+00 : f32
    %145 = vector.broadcast %cst_47 : f32 to vector<2x32xf32>
    %146 = arith.divf %145, %144 : vector<2x32xf32>
    %147 = vector.extract_strided_slice %123 {offsets = [0, 64], sizes = [2, 32], strides = [1, 1]} : vector<2x96xf32> to vector<2x32xf32>
    %148 = vector.extract_strided_slice %126 {offsets = [0, 64], sizes = [2, 32], strides = [1, 1]} : vector<2x96xf32> to vector<2x32xf32>
    %149 = arith.mulf %136, %148 : vector<2x32xf32>
    %150 = arith.addf %147, %149 : vector<2x32xf32>
    %151 = math.tanh %150 : vector<2x32xf32>
    %cst_48 = arith.constant 1.000000e+00 : f32
    %152 = vector.broadcast %cst_48 : f32 to vector<2x32xf32>
    %153 = arith.subf %152, %146 : vector<2x32xf32>
    %154 = arith.mulf %153, %151 : vector<2x32xf32>
    %155 = arith.mulf %146, %122 : vector<2x32xf32>
    %156 = arith.addf %154, %155 : vector<2x32xf32>
    %157 = vector.extract_strided_slice %20 {offsets = [8, 0], sizes = [2, 96], strides = [1, 1]} : vector<16x96xf32> to vector<2x96xf32>
    %cst_49 = arith.constant dense<0.000000e+00> : vector<2x96xf32>
    %158 = tpu.matmul %156, %15, %cst_49 {dimension_numbers = #tpu.dot_dimension_numbers<[1], [0], [0], [1], [0, 0, 1, 1], [], []>} : vector<2x32xf32>, vector<32x96xf32>, vector<2x96xf32> -> vector<2x96xf32>
    %159 = vector.broadcast %17 : vector<1x96xf32> to vector<2x96xf32>
    %160 = arith.addf %158, %159 : vector<2x96xf32>
    %161 = vector.extract_strided_slice %157 {offsets = [0, 0], sizes = [2, 32], strides = [1, 1]} : vector<2x96xf32> to vector<2x32xf32>
    %162 = vector.extract_strided_slice %160 {offsets = [0, 0], sizes = [2, 32], strides = [1, 1]} : vector<2x96xf32> to vector<2x32xf32>
    %163 = arith.addf %161, %162 : vector<2x32xf32>
    %cst_50 = arith.constant 0.000000e+00 : f32
    %164 = vector.broadcast %cst_50 : f32 to vector<2x32xf32>
    %165 = arith.subf %164, %163 : vector<2x32xf32>
    %166 = math.exp %165 : vector<2x32xf32>
    %cst_51 = arith.constant 1.000000e+00 : f32
    %167 = vector.broadcast %cst_51 : f32 to vector<2x32xf32>
    %168 = arith.addf %167, %166 : vector<2x32xf32>
    %cst_52 = arith.constant 1.000000e+00 : f32
    %169 = vector.broadcast %cst_52 : f32 to vector<2x32xf32>
    %170 = arith.divf %169, %168 : vector<2x32xf32>
    %171 = vector.extract_strided_slice %157 {offsets = [0, 32], sizes = [2, 32], strides = [1, 1]} : vector<2x96xf32> to vector<2x32xf32>
    %172 = vector.extract_strided_slice %160 {offsets = [0, 32], sizes = [2, 32], strides = [1, 1]} : vector<2x96xf32> to vector<2x32xf32>
    %173 = arith.addf %171, %172 : vector<2x32xf32>
    %cst_53 = arith.constant 0.000000e+00 : f32
    %174 = vector.broadcast %cst_53 : f32 to vector<2x32xf32>
    %175 = arith.subf %174, %173 : vector<2x32xf32>
    %176 = math.exp %175 : vector<2x32xf32>
    %cst_54 = arith.constant 1.000000e+00 : f32
    %177 = vector.broadcast %cst_54 : f32 to vector<2x32xf32>
    %178 = arith.addf %177, %176 : vector<2x32xf32>
    %cst_55 = arith.constant 1.000000e+00 : f32
    %179 = vector.broadcast %cst_55 : f32 to vector<2x32xf32>
    %180 = arith.divf %179, %178 : vector<2x32xf32>
    %181 = vector.extract_strided_slice %157 {offsets = [0, 64], sizes = [2, 32], strides = [1, 1]} : vector<2x96xf32> to vector<2x32xf32>
    %182 = vector.extract_strided_slice %160 {offsets = [0, 64], sizes = [2, 32], strides = [1, 1]} : vector<2x96xf32> to vector<2x32xf32>
    %183 = arith.mulf %170, %182 : vector<2x32xf32>
    %184 = arith.addf %181, %183 : vector<2x32xf32>
    %185 = math.tanh %184 : vector<2x32xf32>
    %cst_56 = arith.constant 1.000000e+00 : f32
    %186 = vector.broadcast %cst_56 : f32 to vector<2x32xf32>
    %187 = arith.subf %186, %180 : vector<2x32xf32>
    %188 = arith.mulf %187, %185 : vector<2x32xf32>
    %189 = arith.mulf %180, %156 : vector<2x32xf32>
    %190 = arith.addf %188, %189 : vector<2x32xf32>
    %191 = vector.extract_strided_slice %20 {offsets = [10, 0], sizes = [2, 96], strides = [1, 1]} : vector<16x96xf32> to vector<2x96xf32>
    %cst_57 = arith.constant dense<0.000000e+00> : vector<2x96xf32>
    %192 = tpu.matmul %190, %15, %cst_57 {dimension_numbers = #tpu.dot_dimension_numbers<[1], [0], [0], [1], [0, 0, 1, 1], [], []>} : vector<2x32xf32>, vector<32x96xf32>, vector<2x96xf32> -> vector<2x96xf32>
    %193 = vector.broadcast %17 : vector<1x96xf32> to vector<2x96xf32>
    %194 = arith.addf %192, %193 : vector<2x96xf32>
    %195 = vector.extract_strided_slice %191 {offsets = [0, 0], sizes = [2, 32], strides = [1, 1]} : vector<2x96xf32> to vector<2x32xf32>
    %196 = vector.extract_strided_slice %194 {offsets = [0, 0], sizes = [2, 32], strides = [1, 1]} : vector<2x96xf32> to vector<2x32xf32>
    %197 = arith.addf %195, %196 : vector<2x32xf32>
    %cst_58 = arith.constant 0.000000e+00 : f32
    %198 = vector.broadcast %cst_58 : f32 to vector<2x32xf32>
    %199 = arith.subf %198, %197 : vector<2x32xf32>
    %200 = math.exp %199 : vector<2x32xf32>
    %cst_59 = arith.constant 1.000000e+00 : f32
    %201 = vector.broadcast %cst_59 : f32 to vector<2x32xf32>
    %202 = arith.addf %201, %200 : vector<2x32xf32>
    %cst_60 = arith.constant 1.000000e+00 : f32
    %203 = vector.broadcast %cst_60 : f32 to vector<2x32xf32>
    %204 = arith.divf %203, %202 : vector<2x32xf32>
    %205 = vector.extract_strided_slice %191 {offsets = [0, 32], sizes = [2, 32], strides = [1, 1]} : vector<2x96xf32> to vector<2x32xf32>
    %206 = vector.extract_strided_slice %194 {offsets = [0, 32], sizes = [2, 32], strides = [1, 1]} : vector<2x96xf32> to vector<2x32xf32>
    %207 = arith.addf %205, %206 : vector<2x32xf32>
    %cst_61 = arith.constant 0.000000e+00 : f32
    %208 = vector.broadcast %cst_61 : f32 to vector<2x32xf32>
    %209 = arith.subf %208, %207 : vector<2x32xf32>
    %210 = math.exp %209 : vector<2x32xf32>
    %cst_62 = arith.constant 1.000000e+00 : f32
    %211 = vector.broadcast %cst_62 : f32 to vector<2x32xf32>
    %212 = arith.addf %211, %210 : vector<2x32xf32>
    %cst_63 = arith.constant 1.000000e+00 : f32
    %213 = vector.broadcast %cst_63 : f32 to vector<2x32xf32>
    %214 = arith.divf %213, %212 : vector<2x32xf32>
    %215 = vector.extract_strided_slice %191 {offsets = [0, 64], sizes = [2, 32], strides = [1, 1]} : vector<2x96xf32> to vector<2x32xf32>
    %216 = vector.extract_strided_slice %194 {offsets = [0, 64], sizes = [2, 32], strides = [1, 1]} : vector<2x96xf32> to vector<2x32xf32>
    %217 = arith.mulf %204, %216 : vector<2x32xf32>
    %218 = arith.addf %215, %217 : vector<2x32xf32>
    %219 = math.tanh %218 : vector<2x32xf32>
    %cst_64 = arith.constant 1.000000e+00 : f32
    %220 = vector.broadcast %cst_64 : f32 to vector<2x32xf32>
    %221 = arith.subf %220, %214 : vector<2x32xf32>
    %222 = arith.mulf %221, %219 : vector<2x32xf32>
    %223 = arith.mulf %214, %190 : vector<2x32xf32>
    %224 = arith.addf %222, %223 : vector<2x32xf32>
    %225 = vector.extract_strided_slice %20 {offsets = [12, 0], sizes = [2, 96], strides = [1, 1]} : vector<16x96xf32> to vector<2x96xf32>
    %cst_65 = arith.constant dense<0.000000e+00> : vector<2x96xf32>
    %226 = tpu.matmul %224, %15, %cst_65 {dimension_numbers = #tpu.dot_dimension_numbers<[1], [0], [0], [1], [0, 0, 1, 1], [], []>} : vector<2x32xf32>, vector<32x96xf32>, vector<2x96xf32> -> vector<2x96xf32>
    %227 = vector.broadcast %17 : vector<1x96xf32> to vector<2x96xf32>
    %228 = arith.addf %226, %227 : vector<2x96xf32>
    %229 = vector.extract_strided_slice %225 {offsets = [0, 0], sizes = [2, 32], strides = [1, 1]} : vector<2x96xf32> to vector<2x32xf32>
    %230 = vector.extract_strided_slice %228 {offsets = [0, 0], sizes = [2, 32], strides = [1, 1]} : vector<2x96xf32> to vector<2x32xf32>
    %231 = arith.addf %229, %230 : vector<2x32xf32>
    %cst_66 = arith.constant 0.000000e+00 : f32
    %232 = vector.broadcast %cst_66 : f32 to vector<2x32xf32>
    %233 = arith.subf %232, %231 : vector<2x32xf32>
    %234 = math.exp %233 : vector<2x32xf32>
    %cst_67 = arith.constant 1.000000e+00 : f32
    %235 = vector.broadcast %cst_67 : f32 to vector<2x32xf32>
    %236 = arith.addf %235, %234 : vector<2x32xf32>
    %cst_68 = arith.constant 1.000000e+00 : f32
    %237 = vector.broadcast %cst_68 : f32 to vector<2x32xf32>
    %238 = arith.divf %237, %236 : vector<2x32xf32>
    %239 = vector.extract_strided_slice %225 {offsets = [0, 32], sizes = [2, 32], strides = [1, 1]} : vector<2x96xf32> to vector<2x32xf32>
    %240 = vector.extract_strided_slice %228 {offsets = [0, 32], sizes = [2, 32], strides = [1, 1]} : vector<2x96xf32> to vector<2x32xf32>
    %241 = arith.addf %239, %240 : vector<2x32xf32>
    %cst_69 = arith.constant 0.000000e+00 : f32
    %242 = vector.broadcast %cst_69 : f32 to vector<2x32xf32>
    %243 = arith.subf %242, %241 : vector<2x32xf32>
    %244 = math.exp %243 : vector<2x32xf32>
    %cst_70 = arith.constant 1.000000e+00 : f32
    %245 = vector.broadcast %cst_70 : f32 to vector<2x32xf32>
    %246 = arith.addf %245, %244 : vector<2x32xf32>
    %cst_71 = arith.constant 1.000000e+00 : f32
    %247 = vector.broadcast %cst_71 : f32 to vector<2x32xf32>
    %248 = arith.divf %247, %246 : vector<2x32xf32>
    %249 = vector.extract_strided_slice %225 {offsets = [0, 64], sizes = [2, 32], strides = [1, 1]} : vector<2x96xf32> to vector<2x32xf32>
    %250 = vector.extract_strided_slice %228 {offsets = [0, 64], sizes = [2, 32], strides = [1, 1]} : vector<2x96xf32> to vector<2x32xf32>
    %251 = arith.mulf %238, %250 : vector<2x32xf32>
    %252 = arith.addf %249, %251 : vector<2x32xf32>
    %253 = math.tanh %252 : vector<2x32xf32>
    %cst_72 = arith.constant 1.000000e+00 : f32
    %254 = vector.broadcast %cst_72 : f32 to vector<2x32xf32>
    %255 = arith.subf %254, %248 : vector<2x32xf32>
    %256 = arith.mulf %255, %253 : vector<2x32xf32>
    %257 = arith.mulf %248, %224 : vector<2x32xf32>
    %258 = arith.addf %256, %257 : vector<2x32xf32>
    %259 = vector.extract_strided_slice %20 {offsets = [14, 0], sizes = [2, 96], strides = [1, 1]} : vector<16x96xf32> to vector<2x96xf32>
    %cst_73 = arith.constant dense<0.000000e+00> : vector<2x96xf32>
    %260 = tpu.matmul %258, %15, %cst_73 {dimension_numbers = #tpu.dot_dimension_numbers<[1], [0], [0], [1], [0, 0, 1, 1], [], []>} : vector<2x32xf32>, vector<32x96xf32>, vector<2x96xf32> -> vector<2x96xf32>
    %261 = vector.broadcast %17 : vector<1x96xf32> to vector<2x96xf32>
    %262 = arith.addf %260, %261 : vector<2x96xf32>
    %263 = vector.extract_strided_slice %259 {offsets = [0, 0], sizes = [2, 32], strides = [1, 1]} : vector<2x96xf32> to vector<2x32xf32>
    %264 = vector.extract_strided_slice %262 {offsets = [0, 0], sizes = [2, 32], strides = [1, 1]} : vector<2x96xf32> to vector<2x32xf32>
    %265 = arith.addf %263, %264 : vector<2x32xf32>
    %cst_74 = arith.constant 0.000000e+00 : f32
    %266 = vector.broadcast %cst_74 : f32 to vector<2x32xf32>
    %267 = arith.subf %266, %265 : vector<2x32xf32>
    %268 = math.exp %267 : vector<2x32xf32>
    %cst_75 = arith.constant 1.000000e+00 : f32
    %269 = vector.broadcast %cst_75 : f32 to vector<2x32xf32>
    %270 = arith.addf %269, %268 : vector<2x32xf32>
    %cst_76 = arith.constant 1.000000e+00 : f32
    %271 = vector.broadcast %cst_76 : f32 to vector<2x32xf32>
    %272 = arith.divf %271, %270 : vector<2x32xf32>
    %273 = vector.extract_strided_slice %259 {offsets = [0, 32], sizes = [2, 32], strides = [1, 1]} : vector<2x96xf32> to vector<2x32xf32>
    %274 = vector.extract_strided_slice %262 {offsets = [0, 32], sizes = [2, 32], strides = [1, 1]} : vector<2x96xf32> to vector<2x32xf32>
    %275 = arith.addf %273, %274 : vector<2x32xf32>
    %cst_77 = arith.constant 0.000000e+00 : f32
    %276 = vector.broadcast %cst_77 : f32 to vector<2x32xf32>
    %277 = arith.subf %276, %275 : vector<2x32xf32>
    %278 = math.exp %277 : vector<2x32xf32>
    %cst_78 = arith.constant 1.000000e+00 : f32
    %279 = vector.broadcast %cst_78 : f32 to vector<2x32xf32>
    %280 = arith.addf %279, %278 : vector<2x32xf32>
    %cst_79 = arith.constant 1.000000e+00 : f32
    %281 = vector.broadcast %cst_79 : f32 to vector<2x32xf32>
    %282 = arith.divf %281, %280 : vector<2x32xf32>
    %283 = vector.extract_strided_slice %259 {offsets = [0, 64], sizes = [2, 32], strides = [1, 1]} : vector<2x96xf32> to vector<2x32xf32>
    %284 = vector.extract_strided_slice %262 {offsets = [0, 64], sizes = [2, 32], strides = [1, 1]} : vector<2x96xf32> to vector<2x32xf32>
    %285 = arith.mulf %272, %284 : vector<2x32xf32>
    %286 = arith.addf %283, %285 : vector<2x32xf32>
    %287 = math.tanh %286 : vector<2x32xf32>
    %cst_80 = arith.constant 1.000000e+00 : f32
    %288 = vector.broadcast %cst_80 : f32 to vector<2x32xf32>
    %289 = arith.subf %288, %282 : vector<2x32xf32>
    %290 = arith.mulf %289, %287 : vector<2x32xf32>
    %291 = arith.mulf %282, %258 : vector<2x32xf32>
    %292 = arith.addf %290, %291 : vector<2x32xf32>
    %293 = tpu.concatenate %54, %88, %122, %156, %190, %224, %258, %292 in 0 : vector<2x32xf32>, vector<2x32xf32>, vector<2x32xf32>, vector<2x32xf32>, vector<2x32xf32>, vector<2x32xf32>, vector<2x32xf32>, vector<2x32xf32> -> vector<16x32xf32>
    %c1_81 = arith.constant 1 : index
    %c0_82 = arith.constant 0 : index
    %c0_83 = arith.constant 0 : index
    %294 = vector.load %arg2[%c1_81, %c0_82, %c0_83] : memref<2x2x32xf32, #tpu.memory_space<vmem>>, vector<1x2x32xf32>
    %295 = vector.shape_cast %294 : vector<1x2x32xf32> to vector<2x32xf32>
    %c0_84 = arith.constant 0 : index
    %c0_85 = arith.constant 0 : index
    %296 = vector.load %arg7[%c0_84, %c0_85] : memref<32x96xf32, #tpu.memory_space<vmem>>, vector<32x96xf32>
    %c0_86 = arith.constant 0 : index
    %c0_87 = arith.constant 0 : index
    %297 = vector.load %arg8[%c0_86, %c0_87] : memref<32x96xf32, #tpu.memory_space<vmem>>, vector<32x96xf32>
    %c0_88 = arith.constant 0 : index
    %c0_89 = arith.constant 0 : index
    %298 = vector.load %arg9[%c0_88, %c0_89] : memref<1x96xf32, #tpu.memory_space<vmem>>, vector<1x96xf32>
    %c0_90 = arith.constant 0 : index
    %c0_91 = arith.constant 0 : index
    %299 = vector.load %arg10[%c0_90, %c0_91] : memref<1x96xf32, #tpu.memory_space<vmem>>, vector<1x96xf32>
    %cst_92 = arith.constant dense<0.000000e+00> : vector<16x96xf32>
    %300 = tpu.matmul %293, %296, %cst_92 {dimension_numbers = #tpu.dot_dimension_numbers<[1], [0], [0], [1], [0, 0, 1, 1], [], []>} : vector<16x32xf32>, vector<32x96xf32>, vector<16x96xf32> -> vector<16x96xf32>
    %301 = vector.broadcast %298 : vector<1x96xf32> to vector<16x96xf32>
    %302 = arith.addf %300, %301 : vector<16x96xf32>
    %303 = vector.extract_strided_slice %302 {offsets = [0, 0], sizes = [2, 96], strides = [1, 1]} : vector<16x96xf32> to vector<2x96xf32>
    %cst_93 = arith.constant dense<0.000000e+00> : vector<2x96xf32>
    %304 = tpu.matmul %295, %297, %cst_93 {dimension_numbers = #tpu.dot_dimension_numbers<[1], [0], [0], [1], [0, 0, 1, 1], [], []>} : vector<2x32xf32>, vector<32x96xf32>, vector<2x96xf32> -> vector<2x96xf32>
    %305 = vector.broadcast %299 : vector<1x96xf32> to vector<2x96xf32>
    %306 = arith.addf %304, %305 : vector<2x96xf32>
    %307 = vector.extract_strided_slice %303 {offsets = [0, 0], sizes = [2, 32], strides = [1, 1]} : vector<2x96xf32> to vector<2x32xf32>
    %308 = vector.extract_strided_slice %306 {offsets = [0, 0], sizes = [2, 32], strides = [1, 1]} : vector<2x96xf32> to vector<2x32xf32>
    %309 = arith.addf %307, %308 : vector<2x32xf32>
    %cst_94 = arith.constant 0.000000e+00 : f32
    %310 = vector.broadcast %cst_94 : f32 to vector<2x32xf32>
    %311 = arith.subf %310, %309 : vector<2x32xf32>
    %312 = math.exp %311 : vector<2x32xf32>
    %cst_95 = arith.constant 1.000000e+00 : f32
    %313 = vector.broadcast %cst_95 : f32 to vector<2x32xf32>
    %314 = arith.addf %313, %312 : vector<2x32xf32>
    %cst_96 = arith.constant 1.000000e+00 : f32
    %315 = vector.broadcast %cst_96 : f32 to vector<2x32xf32>
    %316 = arith.divf %315, %314 : vector<2x32xf32>
    %317 = vector.extract_strided_slice %303 {offsets = [0, 32], sizes = [2, 32], strides = [1, 1]} : vector<2x96xf32> to vector<2x32xf32>
    %318 = vector.extract_strided_slice %306 {offsets = [0, 32], sizes = [2, 32], strides = [1, 1]} : vector<2x96xf32> to vector<2x32xf32>
    %319 = arith.addf %317, %318 : vector<2x32xf32>
    %cst_97 = arith.constant 0.000000e+00 : f32
    %320 = vector.broadcast %cst_97 : f32 to vector<2x32xf32>
    %321 = arith.subf %320, %319 : vector<2x32xf32>
    %322 = math.exp %321 : vector<2x32xf32>
    %cst_98 = arith.constant 1.000000e+00 : f32
    %323 = vector.broadcast %cst_98 : f32 to vector<2x32xf32>
    %324 = arith.addf %323, %322 : vector<2x32xf32>
    %cst_99 = arith.constant 1.000000e+00 : f32
    %325 = vector.broadcast %cst_99 : f32 to vector<2x32xf32>
    %326 = arith.divf %325, %324 : vector<2x32xf32>
    %327 = vector.extract_strided_slice %303 {offsets = [0, 64], sizes = [2, 32], strides = [1, 1]} : vector<2x96xf32> to vector<2x32xf32>
    %328 = vector.extract_strided_slice %306 {offsets = [0, 64], sizes = [2, 32], strides = [1, 1]} : vector<2x96xf32> to vector<2x32xf32>
    %329 = arith.mulf %316, %328 : vector<2x32xf32>
    %330 = arith.addf %327, %329 : vector<2x32xf32>
    %331 = math.tanh %330 : vector<2x32xf32>
    %cst_100 = arith.constant 1.000000e+00 : f32
    %332 = vector.broadcast %cst_100 : f32 to vector<2x32xf32>
    %333 = arith.subf %332, %326 : vector<2x32xf32>
    %334 = arith.mulf %333, %331 : vector<2x32xf32>
    %335 = arith.mulf %326, %295 : vector<2x32xf32>
    %336 = arith.addf %334, %335 : vector<2x32xf32>
    %337 = vector.extract_strided_slice %302 {offsets = [2, 0], sizes = [2, 96], strides = [1, 1]} : vector<16x96xf32> to vector<2x96xf32>
    %cst_101 = arith.constant dense<0.000000e+00> : vector<2x96xf32>
    %338 = tpu.matmul %336, %297, %cst_101 {dimension_numbers = #tpu.dot_dimension_numbers<[1], [0], [0], [1], [0, 0, 1, 1], [], []>} : vector<2x32xf32>, vector<32x96xf32>, vector<2x96xf32> -> vector<2x96xf32>
    %339 = vector.broadcast %299 : vector<1x96xf32> to vector<2x96xf32>
    %340 = arith.addf %338, %339 : vector<2x96xf32>
    %341 = vector.extract_strided_slice %337 {offsets = [0, 0], sizes = [2, 32], strides = [1, 1]} : vector<2x96xf32> to vector<2x32xf32>
    %342 = vector.extract_strided_slice %340 {offsets = [0, 0], sizes = [2, 32], strides = [1, 1]} : vector<2x96xf32> to vector<2x32xf32>
    %343 = arith.addf %341, %342 : vector<2x32xf32>
    %cst_102 = arith.constant 0.000000e+00 : f32
    %344 = vector.broadcast %cst_102 : f32 to vector<2x32xf32>
    %345 = arith.subf %344, %343 : vector<2x32xf32>
    %346 = math.exp %345 : vector<2x32xf32>
    %cst_103 = arith.constant 1.000000e+00 : f32
    %347 = vector.broadcast %cst_103 : f32 to vector<2x32xf32>
    %348 = arith.addf %347, %346 : vector<2x32xf32>
    %cst_104 = arith.constant 1.000000e+00 : f32
    %349 = vector.broadcast %cst_104 : f32 to vector<2x32xf32>
    %350 = arith.divf %349, %348 : vector<2x32xf32>
    %351 = vector.extract_strided_slice %337 {offsets = [0, 32], sizes = [2, 32], strides = [1, 1]} : vector<2x96xf32> to vector<2x32xf32>
    %352 = vector.extract_strided_slice %340 {offsets = [0, 32], sizes = [2, 32], strides = [1, 1]} : vector<2x96xf32> to vector<2x32xf32>
    %353 = arith.addf %351, %352 : vector<2x32xf32>
    %cst_105 = arith.constant 0.000000e+00 : f32
    %354 = vector.broadcast %cst_105 : f32 to vector<2x32xf32>
    %355 = arith.subf %354, %353 : vector<2x32xf32>
    %356 = math.exp %355 : vector<2x32xf32>
    %cst_106 = arith.constant 1.000000e+00 : f32
    %357 = vector.broadcast %cst_106 : f32 to vector<2x32xf32>
    %358 = arith.addf %357, %356 : vector<2x32xf32>
    %cst_107 = arith.constant 1.000000e+00 : f32
    %359 = vector.broadcast %cst_107 : f32 to vector<2x32xf32>
    %360 = arith.divf %359, %358 : vector<2x32xf32>
    %361 = vector.extract_strided_slice %337 {offsets = [0, 64], sizes = [2, 32], strides = [1, 1]} : vector<2x96xf32> to vector<2x32xf32>
    %362 = vector.extract_strided_slice %340 {offsets = [0, 64], sizes = [2, 32], strides = [1, 1]} : vector<2x96xf32> to vector<2x32xf32>
    %363 = arith.mulf %350, %362 : vector<2x32xf32>
    %364 = arith.addf %361, %363 : vector<2x32xf32>
    %365 = math.tanh %364 : vector<2x32xf32>
    %cst_108 = arith.constant 1.000000e+00 : f32
    %366 = vector.broadcast %cst_108 : f32 to vector<2x32xf32>
    %367 = arith.subf %366, %360 : vector<2x32xf32>
    %368 = arith.mulf %367, %365 : vector<2x32xf32>
    %369 = arith.mulf %360, %336 : vector<2x32xf32>
    %370 = arith.addf %368, %369 : vector<2x32xf32>
    %371 = vector.extract_strided_slice %302 {offsets = [4, 0], sizes = [2, 96], strides = [1, 1]} : vector<16x96xf32> to vector<2x96xf32>
    %cst_109 = arith.constant dense<0.000000e+00> : vector<2x96xf32>
    %372 = tpu.matmul %370, %297, %cst_109 {dimension_numbers = #tpu.dot_dimension_numbers<[1], [0], [0], [1], [0, 0, 1, 1], [], []>} : vector<2x32xf32>, vector<32x96xf32>, vector<2x96xf32> -> vector<2x96xf32>
    %373 = vector.broadcast %299 : vector<1x96xf32> to vector<2x96xf32>
    %374 = arith.addf %372, %373 : vector<2x96xf32>
    %375 = vector.extract_strided_slice %371 {offsets = [0, 0], sizes = [2, 32], strides = [1, 1]} : vector<2x96xf32> to vector<2x32xf32>
    %376 = vector.extract_strided_slice %374 {offsets = [0, 0], sizes = [2, 32], strides = [1, 1]} : vector<2x96xf32> to vector<2x32xf32>
    %377 = arith.addf %375, %376 : vector<2x32xf32>
    %cst_110 = arith.constant 0.000000e+00 : f32
    %378 = vector.broadcast %cst_110 : f32 to vector<2x32xf32>
    %379 = arith.subf %378, %377 : vector<2x32xf32>
    %380 = math.exp %379 : vector<2x32xf32>
    %cst_111 = arith.constant 1.000000e+00 : f32
    %381 = vector.broadcast %cst_111 : f32 to vector<2x32xf32>
    %382 = arith.addf %381, %380 : vector<2x32xf32>
    %cst_112 = arith.constant 1.000000e+00 : f32
    %383 = vector.broadcast %cst_112 : f32 to vector<2x32xf32>
    %384 = arith.divf %383, %382 : vector<2x32xf32>
    %385 = vector.extract_strided_slice %371 {offsets = [0, 32], sizes = [2, 32], strides = [1, 1]} : vector<2x96xf32> to vector<2x32xf32>
    %386 = vector.extract_strided_slice %374 {offsets = [0, 32], sizes = [2, 32], strides = [1, 1]} : vector<2x96xf32> to vector<2x32xf32>
    %387 = arith.addf %385, %386 : vector<2x32xf32>
    %cst_113 = arith.constant 0.000000e+00 : f32
    %388 = vector.broadcast %cst_113 : f32 to vector<2x32xf32>
    %389 = arith.subf %388, %387 : vector<2x32xf32>
    %390 = math.exp %389 : vector<2x32xf32>
    %cst_114 = arith.constant 1.000000e+00 : f32
    %391 = vector.broadcast %cst_114 : f32 to vector<2x32xf32>
    %392 = arith.addf %391, %390 : vector<2x32xf32>
    %cst_115 = arith.constant 1.000000e+00 : f32
    %393 = vector.broadcast %cst_115 : f32 to vector<2x32xf32>
    %394 = arith.divf %393, %392 : vector<2x32xf32>
    %395 = vector.extract_strided_slice %371 {offsets = [0, 64], sizes = [2, 32], strides = [1, 1]} : vector<2x96xf32> to vector<2x32xf32>
    %396 = vector.extract_strided_slice %374 {offsets = [0, 64], sizes = [2, 32], strides = [1, 1]} : vector<2x96xf32> to vector<2x32xf32>
    %397 = arith.mulf %384, %396 : vector<2x32xf32>
    %398 = arith.addf %395, %397 : vector<2x32xf32>
    %399 = math.tanh %398 : vector<2x32xf32>
    %cst_116 = arith.constant 1.000000e+00 : f32
    %400 = vector.broadcast %cst_116 : f32 to vector<2x32xf32>
    %401 = arith.subf %400, %394 : vector<2x32xf32>
    %402 = arith.mulf %401, %399 : vector<2x32xf32>
    %403 = arith.mulf %394, %370 : vector<2x32xf32>
    %404 = arith.addf %402, %403 : vector<2x32xf32>
    %405 = vector.extract_strided_slice %302 {offsets = [6, 0], sizes = [2, 96], strides = [1, 1]} : vector<16x96xf32> to vector<2x96xf32>
    %cst_117 = arith.constant dense<0.000000e+00> : vector<2x96xf32>
    %406 = tpu.matmul %404, %297, %cst_117 {dimension_numbers = #tpu.dot_dimension_numbers<[1], [0], [0], [1], [0, 0, 1, 1], [], []>} : vector<2x32xf32>, vector<32x96xf32>, vector<2x96xf32> -> vector<2x96xf32>
    %407 = vector.broadcast %299 : vector<1x96xf32> to vector<2x96xf32>
    %408 = arith.addf %406, %407 : vector<2x96xf32>
    %409 = vector.extract_strided_slice %405 {offsets = [0, 0], sizes = [2, 32], strides = [1, 1]} : vector<2x96xf32> to vector<2x32xf32>
    %410 = vector.extract_strided_slice %408 {offsets = [0, 0], sizes = [2, 32], strides = [1, 1]} : vector<2x96xf32> to vector<2x32xf32>
    %411 = arith.addf %409, %410 : vector<2x32xf32>
    %cst_118 = arith.constant 0.000000e+00 : f32
    %412 = vector.broadcast %cst_118 : f32 to vector<2x32xf32>
    %413 = arith.subf %412, %411 : vector<2x32xf32>
    %414 = math.exp %413 : vector<2x32xf32>
    %cst_119 = arith.constant 1.000000e+00 : f32
    %415 = vector.broadcast %cst_119 : f32 to vector<2x32xf32>
    %416 = arith.addf %415, %414 : vector<2x32xf32>
    %cst_120 = arith.constant 1.000000e+00 : f32
    %417 = vector.broadcast %cst_120 : f32 to vector<2x32xf32>
    %418 = arith.divf %417, %416 : vector<2x32xf32>
    %419 = vector.extract_strided_slice %405 {offsets = [0, 32], sizes = [2, 32], strides = [1, 1]} : vector<2x96xf32> to vector<2x32xf32>
    %420 = vector.extract_strided_slice %408 {offsets = [0, 32], sizes = [2, 32], strides = [1, 1]} : vector<2x96xf32> to vector<2x32xf32>
    %421 = arith.addf %419, %420 : vector<2x32xf32>
    %cst_121 = arith.constant 0.000000e+00 : f32
    %422 = vector.broadcast %cst_121 : f32 to vector<2x32xf32>
    %423 = arith.subf %422, %421 : vector<2x32xf32>
    %424 = math.exp %423 : vector<2x32xf32>
    %cst_122 = arith.constant 1.000000e+00 : f32
    %425 = vector.broadcast %cst_122 : f32 to vector<2x32xf32>
    %426 = arith.addf %425, %424 : vector<2x32xf32>
    %cst_123 = arith.constant 1.000000e+00 : f32
    %427 = vector.broadcast %cst_123 : f32 to vector<2x32xf32>
    %428 = arith.divf %427, %426 : vector<2x32xf32>
    %429 = vector.extract_strided_slice %405 {offsets = [0, 64], sizes = [2, 32], strides = [1, 1]} : vector<2x96xf32> to vector<2x32xf32>
    %430 = vector.extract_strided_slice %408 {offsets = [0, 64], sizes = [2, 32], strides = [1, 1]} : vector<2x96xf32> to vector<2x32xf32>
    %431 = arith.mulf %418, %430 : vector<2x32xf32>
    %432 = arith.addf %429, %431 : vector<2x32xf32>
    %433 = math.tanh %432 : vector<2x32xf32>
    %cst_124 = arith.constant 1.000000e+00 : f32
    %434 = vector.broadcast %cst_124 : f32 to vector<2x32xf32>
    %435 = arith.subf %434, %428 : vector<2x32xf32>
    %436 = arith.mulf %435, %433 : vector<2x32xf32>
    %437 = arith.mulf %428, %404 : vector<2x32xf32>
    %438 = arith.addf %436, %437 : vector<2x32xf32>
    %439 = vector.extract_strided_slice %302 {offsets = [8, 0], sizes = [2, 96], strides = [1, 1]} : vector<16x96xf32> to vector<2x96xf32>
    %cst_125 = arith.constant dense<0.000000e+00> : vector<2x96xf32>
    %440 = tpu.matmul %438, %297, %cst_125 {dimension_numbers = #tpu.dot_dimension_numbers<[1], [0], [0], [1], [0, 0, 1, 1], [], []>} : vector<2x32xf32>, vector<32x96xf32>, vector<2x96xf32> -> vector<2x96xf32>
    %441 = vector.broadcast %299 : vector<1x96xf32> to vector<2x96xf32>
    %442 = arith.addf %440, %441 : vector<2x96xf32>
    %443 = vector.extract_strided_slice %439 {offsets = [0, 0], sizes = [2, 32], strides = [1, 1]} : vector<2x96xf32> to vector<2x32xf32>
    %444 = vector.extract_strided_slice %442 {offsets = [0, 0], sizes = [2, 32], strides = [1, 1]} : vector<2x96xf32> to vector<2x32xf32>
    %445 = arith.addf %443, %444 : vector<2x32xf32>
    %cst_126 = arith.constant 0.000000e+00 : f32
    %446 = vector.broadcast %cst_126 : f32 to vector<2x32xf32>
    %447 = arith.subf %446, %445 : vector<2x32xf32>
    %448 = math.exp %447 : vector<2x32xf32>
    %cst_127 = arith.constant 1.000000e+00 : f32
    %449 = vector.broadcast %cst_127 : f32 to vector<2x32xf32>
    %450 = arith.addf %449, %448 : vector<2x32xf32>
    %cst_128 = arith.constant 1.000000e+00 : f32
    %451 = vector.broadcast %cst_128 : f32 to vector<2x32xf32>
    %452 = arith.divf %451, %450 : vector<2x32xf32>
    %453 = vector.extract_strided_slice %439 {offsets = [0, 32], sizes = [2, 32], strides = [1, 1]} : vector<2x96xf32> to vector<2x32xf32>
    %454 = vector.extract_strided_slice %442 {offsets = [0, 32], sizes = [2, 32], strides = [1, 1]} : vector<2x96xf32> to vector<2x32xf32>
    %455 = arith.addf %453, %454 : vector<2x32xf32>
    %cst_129 = arith.constant 0.000000e+00 : f32
    %456 = vector.broadcast %cst_129 : f32 to vector<2x32xf32>
    %457 = arith.subf %456, %455 : vector<2x32xf32>
    %458 = math.exp %457 : vector<2x32xf32>
    %cst_130 = arith.constant 1.000000e+00 : f32
    %459 = vector.broadcast %cst_130 : f32 to vector<2x32xf32>
    %460 = arith.addf %459, %458 : vector<2x32xf32>
    %cst_131 = arith.constant 1.000000e+00 : f32
    %461 = vector.broadcast %cst_131 : f32 to vector<2x32xf32>
    %462 = arith.divf %461, %460 : vector<2x32xf32>
    %463 = vector.extract_strided_slice %439 {offsets = [0, 64], sizes = [2, 32], strides = [1, 1]} : vector<2x96xf32> to vector<2x32xf32>
    %464 = vector.extract_strided_slice %442 {offsets = [0, 64], sizes = [2, 32], strides = [1, 1]} : vector<2x96xf32> to vector<2x32xf32>
    %465 = arith.mulf %452, %464 : vector<2x32xf32>
    %466 = arith.addf %463, %465 : vector<2x32xf32>
    %467 = math.tanh %466 : vector<2x32xf32>
    %cst_132 = arith.constant 1.000000e+00 : f32
    %468 = vector.broadcast %cst_132 : f32 to vector<2x32xf32>
    %469 = arith.subf %468, %462 : vector<2x32xf32>
    %470 = arith.mulf %469, %467 : vector<2x32xf32>
    %471 = arith.mulf %462, %438 : vector<2x32xf32>
    %472 = arith.addf %470, %471 : vector<2x32xf32>
    %473 = vector.extract_strided_slice %302 {offsets = [10, 0], sizes = [2, 96], strides = [1, 1]} : vector<16x96xf32> to vector<2x96xf32>
    %cst_133 = arith.constant dense<0.000000e+00> : vector<2x96xf32>
    %474 = tpu.matmul %472, %297, %cst_133 {dimension_numbers = #tpu.dot_dimension_numbers<[1], [0], [0], [1], [0, 0, 1, 1], [], []>} : vector<2x32xf32>, vector<32x96xf32>, vector<2x96xf32> -> vector<2x96xf32>
    %475 = vector.broadcast %299 : vector<1x96xf32> to vector<2x96xf32>
    %476 = arith.addf %474, %475 : vector<2x96xf32>
    %477 = vector.extract_strided_slice %473 {offsets = [0, 0], sizes = [2, 32], strides = [1, 1]} : vector<2x96xf32> to vector<2x32xf32>
    %478 = vector.extract_strided_slice %476 {offsets = [0, 0], sizes = [2, 32], strides = [1, 1]} : vector<2x96xf32> to vector<2x32xf32>
    %479 = arith.addf %477, %478 : vector<2x32xf32>
    %cst_134 = arith.constant 0.000000e+00 : f32
    %480 = vector.broadcast %cst_134 : f32 to vector<2x32xf32>
    %481 = arith.subf %480, %479 : vector<2x32xf32>
    %482 = math.exp %481 : vector<2x32xf32>
    %cst_135 = arith.constant 1.000000e+00 : f32
    %483 = vector.broadcast %cst_135 : f32 to vector<2x32xf32>
    %484 = arith.addf %483, %482 : vector<2x32xf32>
    %cst_136 = arith.constant 1.000000e+00 : f32
    %485 = vector.broadcast %cst_136 : f32 to vector<2x32xf32>
    %486 = arith.divf %485, %484 : vector<2x32xf32>
    %487 = vector.extract_strided_slice %473 {offsets = [0, 32], sizes = [2, 32], strides = [1, 1]} : vector<2x96xf32> to vector<2x32xf32>
    %488 = vector.extract_strided_slice %476 {offsets = [0, 32], sizes = [2, 32], strides = [1, 1]} : vector<2x96xf32> to vector<2x32xf32>
    %489 = arith.addf %487, %488 : vector<2x32xf32>
    %cst_137 = arith.constant 0.000000e+00 : f32
    %490 = vector.broadcast %cst_137 : f32 to vector<2x32xf32>
    %491 = arith.subf %490, %489 : vector<2x32xf32>
    %492 = math.exp %491 : vector<2x32xf32>
    %cst_138 = arith.constant 1.000000e+00 : f32
    %493 = vector.broadcast %cst_138 : f32 to vector<2x32xf32>
    %494 = arith.addf %493, %492 : vector<2x32xf32>
    %cst_139 = arith.constant 1.000000e+00 : f32
    %495 = vector.broadcast %cst_139 : f32 to vector<2x32xf32>
    %496 = arith.divf %495, %494 : vector<2x32xf32>
    %497 = vector.extract_strided_slice %473 {offsets = [0, 64], sizes = [2, 32], strides = [1, 1]} : vector<2x96xf32> to vector<2x32xf32>
    %498 = vector.extract_strided_slice %476 {offsets = [0, 64], sizes = [2, 32], strides = [1, 1]} : vector<2x96xf32> to vector<2x32xf32>
    %499 = arith.mulf %486, %498 : vector<2x32xf32>
    %500 = arith.addf %497, %499 : vector<2x32xf32>
    %501 = math.tanh %500 : vector<2x32xf32>
    %cst_140 = arith.constant 1.000000e+00 : f32
    %502 = vector.broadcast %cst_140 : f32 to vector<2x32xf32>
    %503 = arith.subf %502, %496 : vector<2x32xf32>
    %504 = arith.mulf %503, %501 : vector<2x32xf32>
    %505 = arith.mulf %496, %472 : vector<2x32xf32>
    %506 = arith.addf %504, %505 : vector<2x32xf32>
    %507 = vector.extract_strided_slice %302 {offsets = [12, 0], sizes = [2, 96], strides = [1, 1]} : vector<16x96xf32> to vector<2x96xf32>
    %cst_141 = arith.constant dense<0.000000e+00> : vector<2x96xf32>
    %508 = tpu.matmul %506, %297, %cst_141 {dimension_numbers = #tpu.dot_dimension_numbers<[1], [0], [0], [1], [0, 0, 1, 1], [], []>} : vector<2x32xf32>, vector<32x96xf32>, vector<2x96xf32> -> vector<2x96xf32>
    %509 = vector.broadcast %299 : vector<1x96xf32> to vector<2x96xf32>
    %510 = arith.addf %508, %509 : vector<2x96xf32>
    %511 = vector.extract_strided_slice %507 {offsets = [0, 0], sizes = [2, 32], strides = [1, 1]} : vector<2x96xf32> to vector<2x32xf32>
    %512 = vector.extract_strided_slice %510 {offsets = [0, 0], sizes = [2, 32], strides = [1, 1]} : vector<2x96xf32> to vector<2x32xf32>
    %513 = arith.addf %511, %512 : vector<2x32xf32>
    %cst_142 = arith.constant 0.000000e+00 : f32
    %514 = vector.broadcast %cst_142 : f32 to vector<2x32xf32>
    %515 = arith.subf %514, %513 : vector<2x32xf32>
    %516 = math.exp %515 : vector<2x32xf32>
    %cst_143 = arith.constant 1.000000e+00 : f32
    %517 = vector.broadcast %cst_143 : f32 to vector<2x32xf32>
    %518 = arith.addf %517, %516 : vector<2x32xf32>
    %cst_144 = arith.constant 1.000000e+00 : f32
    %519 = vector.broadcast %cst_144 : f32 to vector<2x32xf32>
    %520 = arith.divf %519, %518 : vector<2x32xf32>
    %521 = vector.extract_strided_slice %507 {offsets = [0, 32], sizes = [2, 32], strides = [1, 1]} : vector<2x96xf32> to vector<2x32xf32>
    %522 = vector.extract_strided_slice %510 {offsets = [0, 32], sizes = [2, 32], strides = [1, 1]} : vector<2x96xf32> to vector<2x32xf32>
    %523 = arith.addf %521, %522 : vector<2x32xf32>
    %cst_145 = arith.constant 0.000000e+00 : f32
    %524 = vector.broadcast %cst_145 : f32 to vector<2x32xf32>
    %525 = arith.subf %524, %523 : vector<2x32xf32>
    %526 = math.exp %525 : vector<2x32xf32>
    %cst_146 = arith.constant 1.000000e+00 : f32
    %527 = vector.broadcast %cst_146 : f32 to vector<2x32xf32>
    %528 = arith.addf %527, %526 : vector<2x32xf32>
    %cst_147 = arith.constant 1.000000e+00 : f32
    %529 = vector.broadcast %cst_147 : f32 to vector<2x32xf32>
    %530 = arith.divf %529, %528 : vector<2x32xf32>
    %531 = vector.extract_strided_slice %507 {offsets = [0, 64], sizes = [2, 32], strides = [1, 1]} : vector<2x96xf32> to vector<2x32xf32>
    %532 = vector.extract_strided_slice %510 {offsets = [0, 64], sizes = [2, 32], strides = [1, 1]} : vector<2x96xf32> to vector<2x32xf32>
    %533 = arith.mulf %520, %532 : vector<2x32xf32>
    %534 = arith.addf %531, %533 : vector<2x32xf32>
    %535 = math.tanh %534 : vector<2x32xf32>
    %cst_148 = arith.constant 1.000000e+00 : f32
    %536 = vector.broadcast %cst_148 : f32 to vector<2x32xf32>
    %537 = arith.subf %536, %530 : vector<2x32xf32>
    %538 = arith.mulf %537, %535 : vector<2x32xf32>
    %539 = arith.mulf %530, %506 : vector<2x32xf32>
    %540 = arith.addf %538, %539 : vector<2x32xf32>
    %541 = vector.extract_strided_slice %302 {offsets = [14, 0], sizes = [2, 96], strides = [1, 1]} : vector<16x96xf32> to vector<2x96xf32>
    %cst_149 = arith.constant dense<0.000000e+00> : vector<2x96xf32>
    %542 = tpu.matmul %540, %297, %cst_149 {dimension_numbers = #tpu.dot_dimension_numbers<[1], [0], [0], [1], [0, 0, 1, 1], [], []>} : vector<2x32xf32>, vector<32x96xf32>, vector<2x96xf32> -> vector<2x96xf32>
    %543 = vector.broadcast %299 : vector<1x96xf32> to vector<2x96xf32>
    %544 = arith.addf %542, %543 : vector<2x96xf32>
    %545 = vector.extract_strided_slice %541 {offsets = [0, 0], sizes = [2, 32], strides = [1, 1]} : vector<2x96xf32> to vector<2x32xf32>
    %546 = vector.extract_strided_slice %544 {offsets = [0, 0], sizes = [2, 32], strides = [1, 1]} : vector<2x96xf32> to vector<2x32xf32>
    %547 = arith.addf %545, %546 : vector<2x32xf32>
    %cst_150 = arith.constant 0.000000e+00 : f32
    %548 = vector.broadcast %cst_150 : f32 to vector<2x32xf32>
    %549 = arith.subf %548, %547 : vector<2x32xf32>
    %550 = math.exp %549 : vector<2x32xf32>
    %cst_151 = arith.constant 1.000000e+00 : f32
    %551 = vector.broadcast %cst_151 : f32 to vector<2x32xf32>
    %552 = arith.addf %551, %550 : vector<2x32xf32>
    %cst_152 = arith.constant 1.000000e+00 : f32
    %553 = vector.broadcast %cst_152 : f32 to vector<2x32xf32>
    %554 = arith.divf %553, %552 : vector<2x32xf32>
    %555 = vector.extract_strided_slice %541 {offsets = [0, 32], sizes = [2, 32], strides = [1, 1]} : vector<2x96xf32> to vector<2x32xf32>
    %556 = vector.extract_strided_slice %544 {offsets = [0, 32], sizes = [2, 32], strides = [1, 1]} : vector<2x96xf32> to vector<2x32xf32>
    %557 = arith.addf %555, %556 : vector<2x32xf32>
    %cst_153 = arith.constant 0.000000e+00 : f32
    %558 = vector.broadcast %cst_153 : f32 to vector<2x32xf32>
    %559 = arith.subf %558, %557 : vector<2x32xf32>
    %560 = math.exp %559 : vector<2x32xf32>
    %cst_154 = arith.constant 1.000000e+00 : f32
    %561 = vector.broadcast %cst_154 : f32 to vector<2x32xf32>
    %562 = arith.addf %561, %560 : vector<2x32xf32>
    %cst_155 = arith.constant 1.000000e+00 : f32
    %563 = vector.broadcast %cst_155 : f32 to vector<2x32xf32>
    %564 = arith.divf %563, %562 : vector<2x32xf32>
    %565 = vector.extract_strided_slice %541 {offsets = [0, 64], sizes = [2, 32], strides = [1, 1]} : vector<2x96xf32> to vector<2x32xf32>
    %566 = vector.extract_strided_slice %544 {offsets = [0, 64], sizes = [2, 32], strides = [1, 1]} : vector<2x96xf32> to vector<2x32xf32>
    %567 = arith.mulf %554, %566 : vector<2x32xf32>
    %568 = arith.addf %565, %567 : vector<2x32xf32>
    %569 = math.tanh %568 : vector<2x32xf32>
    %cst_156 = arith.constant 1.000000e+00 : f32
    %570 = vector.broadcast %cst_156 : f32 to vector<2x32xf32>
    %571 = arith.subf %570, %564 : vector<2x32xf32>
    %572 = arith.mulf %571, %569 : vector<2x32xf32>
    %573 = arith.mulf %564, %540 : vector<2x32xf32>
    %574 = arith.addf %572, %573 : vector<2x32xf32>
    %575 = tpu.concatenate %336, %370, %404, %438, %472, %506, %540, %574 in 0 : vector<2x32xf32>, vector<2x32xf32>, vector<2x32xf32>, vector<2x32xf32>, vector<2x32xf32>, vector<2x32xf32>, vector<2x32xf32>, vector<2x32xf32> -> vector<16x32xf32>
    %c0_157 = arith.constant 0 : index
    %c0_158 = arith.constant 0 : index
    %c0_159 = arith.constant 0 : index
    %576 = vector.load %arg14[%c0_157, %c0_158, %c0_159] : memref<2x2x32xf32, #tpu.memory_space<vmem>>, vector<1x2x32xf32>
    %577 = vector.shape_cast %576 : vector<1x2x32xf32> to vector<2x32xf32>
    %578 = vector.shape_cast %292 : vector<2x32xf32> to vector<1x2x32xf32>
    tpu.vector_store %arg14[%c0_157, %c0_158, %c0_159], %578 {strides = array<i32>} : memref<2x2x32xf32, #tpu.memory_space<vmem>>, vector<1x2x32xf32>,
    %c1_160 = arith.constant 1 : index
    %c0_161 = arith.constant 0 : index
    %c0_162 = arith.constant 0 : index
    %579 = vector.load %arg14[%c1_160, %c0_161, %c0_162] : memref<2x2x32xf32, #tpu.memory_space<vmem>>, vector<1x2x32xf32>
    %580 = vector.shape_cast %579 : vector<1x2x32xf32> to vector<2x32xf32>
    %581 = vector.shape_cast %574 : vector<2x32xf32> to vector<1x2x32xf32>
    tpu.vector_store %arg14[%c1_160, %c0_161, %c0_162], %581 {strides = array<i32>} : memref<2x2x32xf32, #tpu.memory_space<vmem>>, vector<1x2x32xf32>,
    %c0_163 = arith.constant 0 : index
    %c0_164 = arith.constant 0 : index
    %582 = vector.load %arg11[%c0_163, %c0_164] : memref<32x128xf32, #tpu.memory_space<vmem>>, vector<32x128xf32>
    %cst_165 = arith.constant dense<0.000000e+00> : vector<16x128xf32>
    %583 = tpu.matmul %575, %582, %cst_165 {dimension_numbers = #tpu.dot_dimension_numbers<[1], [0], [0], [1], [0, 0, 1, 1], [], []>} : vector<16x32xf32>, vector<32x128xf32>, vector<16x128xf32> -> vector<16x128xf32>
    %c0_166 = arith.constant 0 : index
    %c0_167 = arith.constant 0 : index
    %584 = vector.load %arg12[%c0_166, %c0_167] : memref<1x128xf32, #tpu.memory_space<vmem>>, vector<1x128xf32>
    %585 = vector.broadcast %584 : vector<1x128xf32> to vector<16x128xf32>
    %586 = arith.addf %583, %585 : vector<16x128xf32>
    %c0_168 = arith.constant 0 : index
    %c0_169 = arith.constant 0 : index
    %587 = vector.load %arg13[%c0_168, %c0_169] : memref<16x128xf32, #tpu.memory_space<vmem>>, vector<16x128xf32>
    tpu.vector_store %arg13[%c0_168, %c0_169], %586 {strides = array<i32>} : memref<16x128xf32, #tpu.memory_space<vmem>>, vector<16x128xf32>,
    return
  }
}

</mosaic_0001>

<bundles_post_ra>
// kernel: tpu_custom_call.1
= control target key start
LH: loop header
LB: loop body
LE: loop exit
PB: predicated region body
PF: predicated region fallthrough
CT: control target
= control target key end

     0   :  { %20 = vsyncpa [#allocation3], 0  ;;  %s3532_s0 = inlined_call_operand.vmem [shape: s32[16,1], index: 0, kind: input, shape index: {}]   ;;  %s3533_s1 = inlined_call_operand.vmem [shape: f32[32,16], index: 1, kind: input, shape index: {}]   ;;  %s3534_s2 = inlined_call_operand.hbm [shape: f32[2,2,32], index: 2, kind: input, shape index: {}]   ;;  %s3535_s3 = inlined_call_operand.vmem [shape: f32[48,96], index: 3, kind: input, shape index: {}]   ;;  %s3536_s4 = inlined_call_operand.hbm [shape: f32[32,96], index: 4, kind: input, shape index: {}]   ;;  %s3537_s5 = inlined_call_operand.vmem [shape: f32[1,96], index: 5, kind: input, shape index: {}]   ;;  %s3538_s6 = inlined_call_operand.hbm [shape: f32[1,96], index: 6, kind: input, shape index: {}]   ;;  %s3539_s7 = inlined_call_operand.hbm [shape: f32[32,96], index: 7, kind: input, shape index: {}]   ;;  %s3540_s8 = inlined_call_operand.hbm [shape: f32[32,96], index: 8, kind: input, shape index: {}]   ;;  %s3541_s9 = inlined_call_operand.hbm [shape: f32[1,96], index: 9, kind: input, shape index: {}]   ;;  %s3542_s10 = inlined_call_operand.vmem [shape: f32[1,96], index: 10, kind: input, shape index: {}]   ;;  %s3543_s11 = inlined_call_operand.vmem [shape: f32[32,128], index: 11, kind: input, shape index: {}]   ;;  %s3544_s12 = inlined_call_operand.vmem [shape: f32[1,128], index: 12, kind: input, shape index: {}]   ;;  %s3545_s13 = inlined_call_operand.hbm [shape: f32[16,128], index: 13, kind: output, shape index: {0}]   ;;  %s3546_s14 = inlined_call_operand.hbm [shape: f32[2,2,32], index: 14, kind: output, shape index: {1}]  }
   0x1   :  { %21 = vsyncpa [#allocation6], 0 }
   0x2   :  { %22 = vsyncpa [#allocation9], 0 }
   0x3   :  { %23 = vsyncpa [#allocation12], 0 }
   0x4   :  { %24 = vsyncpa [#allocation4], 0 }
   0x5   :  { %25 = vsyncpa [#allocation15], 0  ;;  %s2947_s29 = smov [#allocation5]  }
   0x6   :  { %s49_s30 = sshll.u32 %s2947_s29, 4  ;;  %s50_s30 = int_to_ptr.vmem [resolvable:$true] %s49_s30 }
   0x7   :  { %s2783_s15 = scalar_lea.vmem %s50_s30, 512  ;;  %p2788_p1 = scmp.lt.s32.totalorder %s50_s30, %s50_s30 }
   0x8   :  { %p2784_p0 = scmp.ne.s32.totalorder %s50_s30, %s2783_s15  ;;  %p2789_p2 = scmp.lt.s32.totalorder %s2783_s15, %s2783_s15 }
   0xa   :  { %p2790_p3 = por %p2789_p2, %p2788_p1 }
   0xc   :  { %p2791_p4 = pnand %p2790_p3, %p2784_p0 }
   0xe   :  { %2794 = shalt.err (!%p2791_p4)
}
   0xf   :  { %s2948_s16 = smov 128   ;;  %s2949_s17 = smov 8  }
  0x10   :  { %55 = dma.hbm_to_vmem [thread:$0]  %s3536_s4, 512, %s50_s30, [#allocation6], %s2948_s16, %s2948_s16, %s2949_s17  }
  0x11   :  { %s2950_s20 = smov [#allocation8]   ;;  %s2951_s22 = smov [#allocation2]  }
  0x12   :  { %s73_s21 = sshll.u32 %s2950_s20, 4  ;;  %s35_s23 = sshll.u32 %s2951_s22, 4  ;;  %s74_s21 = int_to_ptr.vmem [resolvable:$true] %s73_s21  ;;  %s36_s23 = int_to_ptr.vmem [resolvable:$true] %s35_s23 }
  0x13   :  { %s2803_s24 = scalar_lea.vmem %s74_s21, 512  ;;  %p2808_p6 = scmp.lt.s32.totalorder %s74_s21, %s74_s21 }
  0x14   :  { %p2804_p5 = scmp.ne.s32.totalorder %s74_s21, %s2803_s24  ;;  %p2809_p7 = scmp.lt.s32.totalorder %s2803_s24, %s2803_s24 }
  0x16   :  { %p2810_p8 = por %p2809_p7, %p2808_p6 }
  0x18   :  { %p2811_p9 = pnand %p2810_p8, %p2804_p5 }
  0x1a   :  { %2814 = shalt.err (!%p2811_p9)
}
  0x1b   :  { %79 = dma.hbm_to_vmem [thread:$0]  %s3539_s7, 512, %s74_s21, [#allocation9], %s2948_s16, %s2948_s16, %s2949_s17  }
  0x1c   :  { %s2823_s4 = scalar_lea.vmem %s36_s23, 64  ;;  %p2828_p11 = scmp.lt.s32.totalorder %s36_s23, %s36_s23 }
  0x1d   :  { %p2824_p10 = scmp.ne.s32.totalorder %s36_s23, %s2823_s4  ;;  %p2829_p12 = scmp.lt.s32.totalorder %s2823_s4, %s2823_s4 }
  0x1f   :  { %p2830_p13 = por %p2829_p12, %p2828_p11 }
  0x21   :  { %p2831_p0 = pnand %p2830_p13, %p2824_p10 }
  0x23   :  { %2834 = shalt.err (!%p2831_p0)
}
  0x24   :  { %s2952_s27 = smov 32   ;;  %s2953_s28 = smov 2  }
  0x25   :  { %41 = dma.hbm_to_vmem [thread:$0]  %s3534_s2, 64, %s36_s23, [#allocation3], %s2952_s27, %s2952_s27, %s2953_s28  }
  0x26   :  { %s2954_s15 = smov [#allocation7]   ;;  %s2955_s7 = smov [#allocation10]  }
  0x27   :  { %s64_s18 = sshll.u32 %s2954_s15, 4  ;;  %s85_s19 = sshll.u32 %s2955_s7, 4  ;;  %s65_s18 = int_to_ptr.vmem [resolvable:$true] %s64_s18  ;;  %s86_s19 = int_to_ptr.vmem [resolvable:$true] %s85_s19 }
  0x28   :  { %s2843_s20 = scalar_lea.vmem %s65_s18, 16  ;;  %s2847_s21 = scalar_lea.vmem %s65_s18, 32 }
  0x29   :  { %p2844_p1 = scmp.ne.s32.totalorder %s65_s18, %s2843_s20  ;;  %p2848_p2 = scmp.lt.s32.totalorder %s65_s18, %s65_s18 }
  0x2a   :  { %p2849_p3 = scmp.lt.s32.totalorder %s2847_s21, %s2843_s20 }
  0x2c   :  { %p2850_p4 = por %p2849_p3, %p2848_p2 }
  0x2e   :  { %p2851_p5 = pnand %p2850_p4, %p2844_p1 }
  0x30   :  { %2854 = shalt.err (!%p2851_p5)
}
  0x31   :  { %67 = dma.hbm_to_vmem [thread:$0]  %s3538_s6, 16, %s65_s18, [#allocation6]  }
  0x32   :  { %s2863_s25 = scalar_lea.vmem %s86_s19, 512  ;;  %p2868_p7 = scmp.lt.s32.totalorder %s86_s19, %s86_s19 }
  0x33   :  { %p2864_p6 = scmp.ne.s32.totalorder %s86_s19, %s2863_s25  ;;  %p2869_p8 = scmp.lt.s32.totalorder %s2863_s25, %s2863_s25 }
  0x35   :  { %p2870_p9 = por %p2869_p8, %p2868_p7 }
  0x37   :  { %p2871_p10 = pnand %p2870_p9, %p2864_p6 }
  0x39   :  { %2874 = shalt.err (!%p2871_p10)
}
  0x3a   :  { %91 = dma.hbm_to_vmem [thread:$0]  %s3540_s8, 512, %s86_s19, [#allocation9], %s2948_s16, %s2948_s16, %s2949_s17  }
  0x3b   :  { %s2956_s26 = smov [#allocation11]  }
  0x3c   :  { %s98_s4 = sshll.u32 %s2956_s26, 4  ;;  %s99_s4 = int_to_ptr.vmem [resolvable:$true] %s98_s4 }
  0x3d   :  { %s2883_s29 = scalar_lea.vmem %s99_s4, 16  ;;  %s2887_s6 = scalar_lea.vmem %s99_s4, 32 }
  0x3e   :  { %p2884_p11 = scmp.ne.s32.totalorder %s99_s4, %s2883_s29  ;;  %p2888_p12 = scmp.lt.s32.totalorder %s99_s4, %s99_s4 }
  0x3f   :  { %p2889_p13 = scmp.lt.s32.totalorder %s2887_s6, %s2883_s29 }
  0x41   :  { %p2890_p0 = por %p2889_p13, %p2888_p12 }
  0x43   :  { %p2891_p1 = pnand %p2890_p0, %p2884_p11 }
  0x45   :  { %2894 = shalt.err (!%p2891_p1)
}
  0x46   :  { %101 = dma.hbm_to_vmem [thread:$0]  %s3541_s9, 16, %s99_s4, [#allocation12]  }
  0x47   :  { %2935 = dma.done.wait [#allocation3], 64  }
  0x48   :  { %2936 = vsyncadd [#allocation3], 4294967232 }
  0x49   :  { %2937 = dma.done.wait [#allocation6], 528  }
  0x4a   :  { %2938 = vsyncadd [#allocation6], 4294966768 }
  0x4b   :  { %2939 = dma.done.wait [#allocation9], 1024  }
  0x4c   :  { %2940 = vsyncadd [#allocation9], 4294966272 }
  0x4d   :  { %2941 = dma.done.wait [#allocation12], 16  }
  0x4e   :  { %2942 = vsyncadd [#allocation12], 4294967280  ;;  %v2957_v0 = vmov 0   ;;  %v126_v1 = vld [vmem:[%s3532_s0] sm:$0xff]  ;;  %v145_v2 = vld [vmem:[%s3533_s1 + $0x18] sm:$0xff]  ;;  %vm237_vm0 = vcmask 1041408   ;;  %v128_v19 = vlaneseq }
  0x4f   :  { %2678 = vset.pattern.permute.xlu0 %v2957_v0  ;;  %2436 = vmatprep.subr.mxu0 %v145_v2  ;;  %v144_v3 = vld [vmem:[%s3533_s1 + $0x10] sm:$0xff]  ;;  %v127_v4 = vld [vmem:[%s3532_s0 + $0x8] sm:$0xff]  ;;  %v3085_v6 = vld [vmem:[#allocation2 + $0x2] sm:$0x3]  ;;  %vm239_vm1 = vcmask 1043456   ;;  %vm241_vm2 = vcmask 1045504  }
  0x50   :  { %131 = vperm.xlu0 %2678, %v126_v1   ;;  %2437 = vmatpush3.msra.mxu0 %v145_v2  ;;  %v143_v5 = vld [vmem:[%s3533_s1 + $0x8] sm:$0xff]  ;;  %v142_v7 = vld [vmem:[%s3533_s1] sm:$0xff]  ;;  %v231_v8 = vrot.slane %v3085_v6, 6  ;;  %v233_v9 = vrot.slane %v3085_v6, 4  ;;  %v235_v10 = vrot.slane %v3085_v6, 2  ;;  %s2958_s0 = smov 16  }
  0x51   :  { %2438 = vmatprep.subr.mxu0 %v144_v3  ;;  %v2959_v14 = vmov 0.0   ;;  %v256_v15 = vld [vmem:[%s3535_s3 + $0x28] sm:$0xff]  ;;  %v255_v16 = vld [vmem:[%s3535_s3 + $0x20] sm:$0xff]  ;;  %v254_v17 = vld [vmem:[%s3535_s3 + $0x18] sm:$0xff]  ;;  %v129_v20 = vand.u32 127, %v128_v19  ;;  %vm146_vm3 = vcmask 261120  }
  0x52   :  { %2439 = vmatpush3.msra.mxu0 %v144_v3  ;;  %v238_v11 = vsel %vm237_vm0, %v3085_v6, %v231_v8  ;;  %2447 = vmatprep.subr.mxu1 %v256_v15  ;;  %v253_v18 = vld [vmem:[%s3535_s3 + $0x10] sm:$0xff]  ;;  %v3112_v24 = vld [vmem:[#allocation5 + $0x18] sm:$0xff]  ;;  %vm2960_vm6 = vmmov 0   ;;  %v3126_v28 = vld [vmem:[#allocation5] sm:$0xff]  ;;  %vm247_vm7 = vcmask 130048   ;;  %vm269_vm8 = vcmask 392192  }
  0x53   :  { %2440 = vmatprep.subr.mxu0 %v143_v5  ;;  %v240_v12 = vsel %vm239_vm1, %v238_v11, %v233_v9  ;;  %2448 = vmatpush3.msra.mxu1 %v256_v15  ;;  %v3116_v26 = vld [vmem:[#allocation5 + $0x10] sm:$0xff]  ;;  %v3122_v27 = vld [vmem:[#allocation5 + $0x8] sm:$0xff]  ;;  %v250_v29 = vld [vmem:[#allocation2] sm:$0x3]  ;;  %vm2157_vm9 = vcmask 261126  }
  0x54   :  { %134 = vperm.xlu0 %2678, %v127_v4   ;;  %2441 = vmatpush3.msra.mxu0 %v143_v5  ;;  %v242_v13 = vsel %vm241_vm2, %v240_v12, %v235_v10  ;;  %v252_v30 = vld [vmem:[%s3535_s3 + $0x8] sm:$0xff]  ;;  %v251_v31 = vld [vmem:[%s3535_s3] sm:$0xff]  ;;  %s2961_s3 = smov 64  }
  0x55   :  { %2442 = vmatprep.subr.mxu0 %v142_v7  ;;  %244 = vrot.lane.b32.xlu1 %v242_v13, %s2958_s0  ;;  %v3150_v37 = vld [vmem:[#allocation7] ss:$0 sm:$0xff]  ;;  %v2303_v41 = vld [vmem:[%s3537_s5] ss:$0 sm:$0xff]  ;;  %s2962_s5 = smov 96  }
  0x56   :  { %2443 = vmatpush3.msra.mxu0 %v142_v7  ;;  %2449 = vmatprep.subr.mxu1 %v255_v16 }
  0x57   :  { %2462 = vmatprep.subr.mxu0 %v2959_v14  ;;  %2450 = vmatpush3.msra.mxu1 %v255_v16 }
  0x58   :  { %2451 = vmatprep.subr.mxu1 %v254_v17 }
  0x59   :  { %2452 = vmatpush3.msra.mxu1 %v254_v17 }
  0x5a   :  { %2453 = vmatprep.subr.mxu1 %v253_v18 }
  0x5b   :  { %2454 = vmatpush3.msra.mxu1 %v253_v18 }
  0x5c   :  { %2455 = vmatprep.subr.mxu1 %v252_v30 }
  0x5d   :  { %2456 = vmatpush3.msra.mxu1 %v252_v30 }
  0x5e   :  { %2457 = vmatprep.subr.mxu1 %v251_v31 }
  0x5f   :  { %2458 = vmatpush3.msra.mxu1 %v251_v31 }
  0x60   :  { %2473 = vmatprep.subr.mxu1 %v2959_v14 }
  0xc7   :  { %v245_v33 = vpop.permute.xlu1 %244 }
  0xcb   :  { %v132_v21 = vpop.permute.xlu0 %131 }
  0xcc   :  { %vm136_vm4 = vcmp.eq.s32.totalorder %v129_v20, %v132_v21 }
  0xcd   :  { %v2299_v22 = vsel %vm136_vm4, 1.0, %v2959_v14 }
  0xce   :  { %2444 = vmatprep.mubr.msk.f32.mxu0 %vm146_vm3, %v2299_v22 }
  0xcf   :  { %v135_v23 = vpop.permute.xlu0 %134 }
  0xd0   :  { %vm137_vm5 = vcmp.eq.s32.totalorder %v129_v20, %v135_v23 }
  0xd1   :  { %v2300_v25 = vsel %vm137_vm5, 1.0, %v2959_v14 }
  0xd2   :  { %2445 = vmatmul.mubr.msk.f32.vlgmr.msra.gmra.mxu0 %vm146_vm3, %v2300_v25 }
  0xd3   :  { %2463 = vmatpush3.msra.mxu0 %v3112_v24  ;;  %2470 = vmatprep.mubr.msk.f32.mxu0 %vm2960_vm6, %v2959_v14 }
  0xd4   :  { %2464 = vmatprep.subr.mxu0 %v2959_v14 }
  0xd5   :  { %2465 = vmatpush3.msra.mxu0 %v3116_v26 }
  0xd6   :  { %2466 = vmatprep.subr.mxu0 %v2959_v14 }
  0xd7   :  { %2467 = vmatpush3.msra.mxu0 %v3122_v27 }
  0xd8   :  { %2468 = vmatprep.subr.mxu0 %v2959_v14 }
  0xd9   :  { %2469 = vmatpush3.msra.mxu0 %v3126_v28 }
  0xda   :  { %2471 = vmatmul.mubr.msk.f32.vlgmr.msra.gmra.mxu0 %vm146_vm3, %v250_v29  ;;  %2484 = vmatprep.subr.mxu0 %v2959_v14 }
  0xdb   :  { %2485 = vmatpush3.msra.mxu0 %v3112_v24  ;;  %2492 = vmatprep.mubr.msk.f32.mxu0 %vm2960_vm6, %v2959_v14 }
  0xdc   :  { %2486 = vmatprep.subr.mxu0 %v2959_v14 }
  0xdd   :  { %2487 = vmatpush3.msra.mxu0 %v3116_v26 }
  0xde   :  { %2488 = vmatprep.subr.mxu0 %v2959_v14 }
  0xdf   :  { %2489 = vmatpush3.msra.mxu0 %v3122_v27 }
  0xe0   :  { %2490 = vmatprep.subr.mxu0 %v2959_v14 }
  0xe1   :  { %2491 = vmatpush3.msra.mxu0 %v3126_v28 }
  0xe2   :  { %2506 = vmatprep.subr.mxu0 %v2959_v14 }
 0x192   :  { %v2446_v32 = vpop.f32.mrf.mxu0 }
 0x193   :  { %v249_v36 = vsel %vm247_vm7, %v2446_v32, %v245_v33 }
 0x194   :  { %v219_v34 = vpop.f32.mrf.mxu0 }
 0x195   :  { %v248_v35 = vsel %vm247_vm7, %v219_v34, %v245_v33 }
 0x196   :  { %2459 = vmatprep.mubr.msk.f32.mxu1 %vm269_vm8, %v248_v35 }
 0x197   :  { %2460 = vmatmul.mubr.msk.f32.vlgmr.msra.gmra.mxu1 %vm269_vm8, %v249_v36 }
 0x198   :  { %2474 = vmatpush3.msra.mxu1 %v3112_v24  ;;  %2481 = vmatprep.mubr.msk.f32.mxu1 %vm2960_vm6, %v2959_v14 }
 0x199   :  { %2475 = vmatprep.subr.mxu1 %v2959_v14 }
 0x19a   :  { %v426_v38 = vpop.f32.mrf.mxu0  ;;  %2476 = vmatpush3.msra.mxu1 %v3116_v26 }
 0x19b   :  { %v427_v39 = vadd.f32 %v3150_v37, %v426_v38  ;;  %2477 = vmatprep.subr.mxu1 %v2959_v14 }
 0x19c   :  { %v2472_v40 = vpop.f32.mrf.mxu0  ;;  %2478 = vmatpush3.msra.mxu1 %v3122_v27 }
 0x19d   :  { %438 = vrot.lane.b32.xlu1 %v427_v39, %s2961_s3  ;;  %2479 = vmatprep.subr.mxu1 %v2959_v14 }
 0x19e   :  { %2480 = vmatpush3.msra.mxu1 %v3126_v28 }
 0x19f   :  { %2495 = vmatprep.subr.mxu1 %v2959_v14 }
 0x20f   :  { %v439_v51 = vpop.permute.xlu1 %438 }
 0x257   :  { %v2461_v42 = vpop.f32.mrf.mxu1 }
 0x258   :  { %v3167_v43 = vadd.f32 %v2461_v42, %v2303_v41 }
 0x259   :  { %v342_v44 = vpop.f32.mrf.mxu1 }
 0x25a   :  { %v3169_v45 = vadd.f32 %v2303_v41, %v342_v44 }
 0x25c   :  { %v430_v46 = vadd.f32 %v427_v39, %v3169_v45 }
 0x25e   :  { %v431_v47 = vsub.f32 0.0, %v430_v46 }
 0x260   :  { %v432_v48 = vmul.f32 1.442695, %v431_v47 }
 0x262   :  { %2679 = vpow2.f32 %v432_v48 }
 0x26f   :  { %v2680_v49 = vpop.eup %2679 }
 0x270   :  { %v434_v50 = vadd.f32 1.0, %v2680_v49 }
 0x272   :  { %2681 = vrcp.f32 %v434_v50 }
 0x27f   :  { %v2682_v52 = vpop.eup %2681 }
 0x280   :  { %v441_v53 = vmul.f32 %v2682_v52, %v439_v51  ;;  %v448_v58 = vsub.f32 1.0, %v2682_v52 }
 0x282   :  { %443 = vrot.lane.b32.xlu0 %v441_v53, %s2961_s3 }
 0x286   :  { %454 = vrot.lane.b32.xlu0 %v250_v29, %s2952_s27 }
 0x2f4   :  { %v444_v54 = vpop.permute.xlu0 %443 }
 0x2f5   :  { %v446_v55 = vadd.f32 %v444_v54, %v3169_v45 }
 0x2f7   :  { %2683 = vtanh.f32 %v446_v55 }
 0x2f8   :  { %v455_v57 = vpop.permute.xlu0 %454 }
 0x2f9   :  { %v457_v60 = vmul.f32 %v2682_v52, %v455_v57 }
 0x304   :  { %v2684_v56 = vpop.eup %2683 }
 0x305   :  { %450 = vrot.lane.b32.xlu1 %v2684_v56, %s2962_s5 }
 0x377   :  { %v451_v59 = vpop.permute.xlu1 %450 }
 0x378   :  { %v453_v61 = vmul.f32 %v451_v59, %v448_v58 }
 0x37a   :  { %v3176_v62 = vadd.f32 %v457_v60, %v453_v61 }
 0x37c   :  { %460 = vrot.lane.b32.xlu1 %v3176_v62, %s2962_s5  ;;  %v560_v18 = vrot.slane %v3176_v62, 6 }
 0x3ee   :  { %v461_v63 = vpop.permute.xlu1 %460 }
 0x3ef   :  { %2482 = vmatmul.mubr.msk.f32.vlgmr.msra.gmra.mxu1 %vm146_vm3, %v461_v63 }
 0x3f0   :  { %2496 = vmatpush3.msra.mxu1 %v3112_v24  ;;  %2503 = vmatprep.mubr.msk.f32.mxu1 %vm2960_vm6, %v2959_v14 }
 0x3f1   :  { %2497 = vmatprep.subr.mxu1 %v2959_v14 }
 0x3f2   :  { %2498 = vmatpush3.msra.mxu1 %v3116_v26 }
 0x3f3   :  { %2499 = vmatprep.subr.mxu1 %v2959_v14 }
 0x3f4   :  { %2500 = vmatpush3.msra.mxu1 %v3122_v27 }
 0x3f5   :  { %2501 = vmatprep.subr.mxu1 %v2959_v14 }
 0x3f6   :  { %2502 = vmatpush3.msra.mxu1 %v3126_v28 }
 0x3f7   :  { %2517 = vmatprep.subr.mxu1 %v2959_v14 }
 0x4af   :  { %v530_v0 = vpop.f32.mrf.mxu1 }
 0x4b0   :  { %v531_v1 = vadd.f32 %v3150_v37, %v530_v0 }
 0x4b1   :  { %v2483_v2 = vpop.f32.mrf.mxu1 }
 0x4b2   :  { %v535_v3 = vrot.slane %v531_v1, 6 }
 0x4b4   :  { %544 = vrot.lane.b32.xlu0 %v535_v3, %s2961_s3  ;;  %v537_v4 = vadd.f32 %v535_v3, %v3169_v45 }
 0x4b6   :  { %v538_v5 = vsub.f32 0.0, %v537_v4 }
 0x4b8   :  { %v539_v7 = vmul.f32 1.442695, %v538_v5 }
 0x4ba   :  { %2685 = vpow2.f32 %v539_v7 }
 0x4c7   :  { %v2686_v8 = vpop.eup %2685 }
 0x4c8   :  { %v541_v9 = vadd.f32 1.0, %v2686_v8 }
 0x4ca   :  { %2687 = vrcp.f32 %v541_v9 }
 0x4d7   :  { %v2688_v10 = vpop.eup %2687 }
 0x4d8   :  { %v554_v17 = vsub.f32 1.0, %v2688_v10  ;;  %v562_v21 = vmul.f32 %v2688_v10, %v560_v18 }
 0x526   :  { %v545_v11 = vpop.permute.xlu0 %544 }
 0x527   :  { %v547_v12 = vmul.f32 %v2688_v10, %v545_v11 }
 0x529   :  { %549 = vrot.lane.b32.xlu1 %v547_v12, %s2961_s3 }
 0x59b   :  { %v550_v13 = vpop.permute.xlu1 %549 }
 0x59c   :  { %v552_v15 = vadd.f32 %v550_v13, %v3169_v45 }
 0x59e   :  { %2689 = vtanh.f32 %v552_v15 }
 0x5ab   :  { %v2690_v16 = vpop.eup %2689 }
 0x5ac   :  { %556 = vrot.lane.b32.xlu0 %v2690_v16, %s2962_s5 }
 0x61e   :  { %v557_v19 = vpop.permute.xlu0 %556 }
 0x61f   :  { %v559_v20 = vmul.f32 %v557_v19, %v554_v17 }
 0x621   :  { %v563_v22 = vadd.f32 %v562_v21, %v559_v20 }
 0x623   :  { %v565_v23 = vrot.slane %v563_v22, 2  ;;  %v666_v48 = vrot.slane %v563_v22, 6  ;;  %v1196_v53 = vsel %vm237_vm0, %v3176_v62, %v563_v22 }
 0x625   :  { %566 = vrot.lane.b32.xlu1 %v565_v23, %s2962_s5 }
 0x697   :  { %v567_v25 = vpop.permute.xlu1 %566 }
 0x698   :  { %2493 = vmatmul.mubr.msk.f32.vlgmr.msra.gmra.mxu0 %vm146_vm3, %v567_v25 }
 0x699   :  { %2507 = vmatpush3.msra.mxu0 %v3112_v24  ;;  %2514 = vmatprep.mubr.msk.f32.mxu0 %vm2960_vm6, %v2959_v14 }
 0x69a   :  { %2508 = vmatprep.subr.mxu0 %v2959_v14 }
 0x69b   :  { %2509 = vmatpush3.msra.mxu0 %v3116_v26 }
 0x69c   :  { %2510 = vmatprep.subr.mxu0 %v2959_v14 }
 0x69d   :  { %2511 = vmatpush3.msra.mxu0 %v3122_v27 }
 0x69e   :  { %2512 = vmatprep.subr.mxu0 %v2959_v14 }
 0x69f   :  { %2513 = vmatpush3.msra.mxu0 %v3126_v28 }
 0x6a0   :  { %2528 = vmatprep.subr.mxu0 %v2959_v14 }
 0x758   :  { %v636_v29 = vpop.f32.mrf.mxu0 }
 0x759   :  { %v637_v30 = vadd.f32 %v3150_v37, %v636_v29 }
 0x75a   :  { %v2494_v31 = vpop.f32.mrf.mxu0 }
 0x75b   :  { %v641_v32 = vrot.slane %v637_v30, 4 }
 0x75d   :  { %650 = vrot.lane.b32.xlu0 %v641_v32, %s2961_s3  ;;  %v643_v33 = vadd.f32 %v641_v32, %v3169_v45 }
 0x75f   :  { %v644_v34 = vsub.f32 0.0, %v643_v33 }
 0x761   :  { %v645_v35 = vmul.f32 1.442695, %v644_v34 }
 0x763   :  { %2691 = vpow2.f32 %v645_v35 }
 0x770   :  { %v2692_v36 = vpop.eup %2691 }
 0x771   :  { %v647_v38 = vadd.f32 1.0, %v2692_v36 }
 0x773   :  { %2693 = vrcp.f32 %v647_v38 }
 0x780   :  { %v2694_v39 = vpop.eup %2693 }
 0x781   :  { %v660_v47 = vsub.f32 1.0, %v2694_v39  ;;  %v668_v50 = vmul.f32 %v2694_v39, %v666_v48 }
 0x7cf   :  { %v651_v40 = vpop.permute.xlu0 %650 }
 0x7d0   :  { %v653_v41 = vmul.f32 %v2694_v39, %v651_v40 }
 0x7d2   :  { %655 = vrot.lane.b32.xlu1 %v653_v41, %s2961_s3 }
 0x844   :  { %v656_v42 = vpop.permute.xlu1 %655 }
 0x845   :  { %v658_v44 = vadd.f32 %v656_v42, %v3169_v45 }
 0x847   :  { %2695 = vtanh.f32 %v658_v44 }
 0x854   :  { %v2696_v46 = vpop.eup %2695 }
 0x855   :  { %662 = vrot.lane.b32.xlu0 %v2696_v46, %s2962_s5 }
 0x8c7   :  { %v663_v49 = vpop.permute.xlu0 %662 }
 0x8c8   :  { %v665_v51 = vmul.f32 %v663_v49, %v660_v47 }
 0x8ca   :  { %v669_v52 = vadd.f32 %v668_v50, %v665_v51 }
 0x8cc   :  { %v671_v54 = vrot.slane %v669_v52, 4  ;;  %v1197_v55 = vsel %vm239_vm1, %v1196_v53, %v669_v52  ;;  %v772_v10 = vrot.slane %v669_v52, 6 }
 0x8ce   :  { %672 = vrot.lane.b32.xlu1 %v671_v54, %s2962_s5 }
 0x940   :  { %v673_v56 = vpop.permute.xlu1 %672 }
 0x941   :  { %2504 = vmatmul.mubr.msk.f32.vlgmr.msra.gmra.mxu1 %vm146_vm3, %v673_v56 }
 0x942   :  { %2518 = vmatpush3.msra.mxu1 %v3112_v24  ;;  %2525 = vmatprep.mubr.msk.f32.mxu1 %vm2960_vm6, %v2959_v14 }
 0x943   :  { %2519 = vmatprep.subr.mxu1 %v2959_v14 }
 0x944   :  { %2520 = vmatpush3.msra.mxu1 %v3116_v26 }
 0x945   :  { %2521 = vmatprep.subr.mxu1 %v2959_v14 }
 0x946   :  { %2522 = vmatpush3.msra.mxu1 %v3122_v27 }
 0x947   :  { %2523 = vmatprep.subr.mxu1 %v2959_v14 }
 0x948   :  { %2524 = vmatpush3.msra.mxu1 %v3126_v28 }
 0x949   :  { %2539 = vmatprep.subr.mxu1 %v2959_v14 }
 0xa01   :  { %v742_v57 = vpop.f32.mrf.mxu1 }
 0xa02   :  { %v743_v58 = vadd.f32 %v3150_v37, %v742_v57 }
 0xa03   :  { %v2505_v59 = vpop.f32.mrf.mxu1 }
 0xa04   :  { %v747_v60 = vrot.slane %v743_v58, 2 }
 0xa06   :  { %756 = vrot.lane.b32.xlu0 %v747_v60, %s2961_s3  ;;  %v749_v61 = vadd.f32 %v747_v60, %v3169_v45 }
 0xa08   :  { %v750_v62 = vsub.f32 0.0, %v749_v61 }
 0xa0a   :  { %v751_v63 = vmul.f32 1.442695, %v750_v62 }
 0xa0c   :  { %2697 = vpow2.f32 %v751_v63 }
 0xa19   :  { %v2698_v0 = vpop.eup %2697 }
 0xa1a   :  { %v753_v1 = vadd.f32 1.0, %v2698_v0 }
 0xa1c   :  { %2699 = vrcp.f32 %v753_v1 }
 0xa29   :  { %v2700_v2 = vpop.eup %2699 }
 0xa2a   :  { %v766_v9 = vsub.f32 1.0, %v2700_v2  ;;  %v774_v12 = vmul.f32 %v2700_v2, %v772_v10 }
 0xa78   :  { %v757_v3 = vpop.permute.xlu0 %756 }
 0xa79   :  { %v759_v4 = vmul.f32 %v2700_v2, %v757_v3 }
 0xa7b   :  { %761 = vrot.lane.b32.xlu1 %v759_v4, %s2961_s3 }
 0xaed   :  { %v762_v5 = vpop.permute.xlu1 %761 }
 0xaee   :  { %v764_v7 = vadd.f32 %v762_v5, %v3169_v45 }
 0xaf0   :  { %2701 = vtanh.f32 %v764_v7 }
 0xafd   :  { %v2702_v8 = vpop.eup %2701 }
 0xafe   :  { %768 = vrot.lane.b32.xlu0 %v2702_v8, %s2962_s5 }
 0xb70   :  { %v769_v11 = vpop.permute.xlu0 %768 }
 0xb71   :  { %v771_v13 = vmul.f32 %v769_v11, %v766_v9 }
 0xb73   :  { %v775_v15 = vadd.f32 %v774_v12, %v771_v13 }
 0xb75   :  { %v777_v16 = vrot.slane %v775_v15, 6  ;;  %v3238_v17 = vsel %vm241_vm2, %v1197_v55, %v775_v15 }
 0xb77   :  { %778 = vrot.lane.b32.xlu1 %v777_v16, %s2962_s5 }
 0xbe9   :  { %v779_v18 = vpop.permute.xlu1 %778 }
 0xbea   :  { %2515 = vmatmul.mubr.msk.f32.vlgmr.msra.gmra.mxu0 %vm146_vm3, %v779_v18 }
 0xbeb   :  { %2529 = vmatpush3.msra.mxu0 %v3112_v24  ;;  %2536 = vmatprep.mubr.msk.f32.mxu0 %vm2960_vm6, %v2959_v14 }
 0xbec   :  { %2530 = vmatprep.subr.mxu0 %v2959_v14 }
 0xbed   :  { %2531 = vmatpush3.msra.mxu0 %v3116_v26 }
 0xbee   :  { %2532 = vmatprep.subr.mxu0 %v2959_v14 }
 0xbef   :  { %2533 = vmatpush3.msra.mxu0 %v3122_v27 }
 0xbf0   :  { %2534 = vmatprep.subr.mxu0 %v2959_v14 }
 0xbf1   :  { %2535 = vmatpush3.msra.mxu0 %v3126_v28 }
 0xcaa   :  { %v848_v45 = vpop.f32.mrf.mxu0 }
 0xcab   :  { %v849_v19 = vadd.f32 %v3150_v37, %v848_v45 }
 0xcac   :  { %v2516_v20 = vpop.f32.mrf.mxu0 }
 0xcad   :  { %860 = vrot.lane.b32.xlu0 %v849_v19, %s2961_s3  ;;  %v852_v21 = vadd.f32 %v849_v19, %v3167_v43 }
 0xcaf   :  { %v853_v22 = vsub.f32 0.0, %v852_v21 }
 0xcb1   :  { %v854_v23 = vmul.f32 1.442695, %v853_v22 }
 0xcb3   :  { %2703 = vpow2.f32 %v854_v23 }
 0xcc0   :  { %v2704_v25 = vpop.eup %2703 }
 0xcc1   :  { %v856_v29 = vadd.f32 1.0, %v2704_v25 }
 0xcc3   :  { %2705 = vrcp.f32 %v856_v29 }
 0xcd0   :  { %v2706_v30 = vpop.eup %2705 }
 0xcd1   :  { %v870_v36 = vsub.f32 1.0, %v2706_v30  ;;  %v877_v39 = vmul.f32 %v2706_v30, %v777_v16 }
 0xd1f   :  { %v861_v31 = vpop.permute.xlu0 %860 }
 0xd20   :  { %v863_v32 = vmul.f32 %v2706_v30, %v861_v31 }
 0xd22   :  { %865 = vrot.lane.b32.xlu1 %v863_v32, %s2961_s3 }
 0xd94   :  { %v866_v33 = vpop.permute.xlu1 %865 }
 0xd95   :  { %v868_v34 = vadd.f32 %v866_v33, %v3167_v43 }
 0xd97   :  { %2707 = vtanh.f32 %v868_v34 }
 0xda4   :  { %v2708_v35 = vpop.eup %2707 }
 0xda5   :  { %872 = vrot.lane.b32.xlu0 %v2708_v35, %s2962_s5 }
 0xe17   :  { %v873_v38 = vpop.permute.xlu0 %872 }
 0xe18   :  { %v875_v40 = vmul.f32 %v873_v38, %v870_v36 }
 0xe1a   :  { %v3257_v41 = vadd.f32 %v877_v39, %v875_v40 }
 0xe1c   :  { %880 = vrot.lane.b32.xlu1 %v3257_v41, %s2962_s5  ;;  %v980_v57 = vrot.slane %v3257_v41, 6 }
 0xe8e   :  { %v881_v42 = vpop.permute.xlu1 %880 }
 0xe8f   :  { %2526 = vmatmul.mubr.msk.f32.vlgmr.msra.gmra.mxu1 %vm146_vm3, %v881_v42 }
 0xe90   :  { %2540 = vmatpush3.msra.mxu1 %v3112_v24  ;;  %2547 = vmatprep.mubr.msk.f32.mxu1 %vm2960_vm6, %v2959_v14 }
 0xe91   :  { %2541 = vmatprep.subr.mxu1 %v2959_v14 }
 0xe92   :  { %2542 = vmatpush3.msra.mxu1 %v3116_v26 }
 0xe93   :  { %2543 = vmatprep.subr.mxu1 %v2959_v14 }
 0xe94   :  { %2544 = vmatpush3.msra.mxu1 %v3122_v27 }
 0xe95   :  { %2545 = vmatprep.subr.mxu1 %v2959_v14 }
 0xe96   :  { %2546 = vmatpush3.msra.mxu1 %v3126_v28 }
 0xe97   :  { %2561 = vmatprep.subr.mxu1 %v2959_v14 }
 0xf4f   :  { %v950_v44 = vpop.f32.mrf.mxu1 }
 0xf50   :  { %v951_v24 = vadd.f32 %v3150_v37, %v950_v44 }
 0xf51   :  { %v2527_v46 = vpop.f32.mrf.mxu1 }
 0xf52   :  { %v955_v47 = vrot.slane %v951_v24, 6 }
 0xf54   :  { %964 = vrot.lane.b32.xlu0 %v955_v47, %s2961_s3  ;;  %v957_v48 = vadd.f32 %v955_v47, %v3167_v43  ;;  %v3308_v47 = vld [vmem:[#allocation10 + $0x18] sm:$0xff] }
 0xf56   :  { %v958_v26 = vsub.f32 0.0, %v957_v48  ;;  %v3310_v48 = vld [vmem:[#allocation10 + $0x10] sm:$0xff] }
 0xf58   :  { %v959_v49 = vmul.f32 1.442695, %v958_v26  ;;  %v1205_v26 = vld [vmem:[#allocation8 + $0x18] sm:$0xff] }
 0xf59   :  { %2550 = vmatprep.subr.mxu0 %v1205_v26 }
 0xf5a   :  { %2709 = vpow2.f32 %v959_v49  ;;  %v1204_v49 = vld [vmem:[#allocation8 + $0x10] sm:$0xff] }
 0xf67   :  { %v2710_v50 = vpop.eup %2709 }
 0xf68   :  { %v961_v27 = vadd.f32 1.0, %v2710_v50  ;;  %v3314_v50 = vld [vmem:[#allocation10 + $0x8] sm:$0xff] }
 0xf6a   :  { %2711 = vrcp.f32 %v961_v27  ;;  %v1202_v27 = vld [vmem:[#allocation8] sm:$0xff] }
 0xf77   :  { %v2712_v51 = vpop.eup %2711 }
 0xf78   :  { %v974_v56 = vsub.f32 1.0, %v2712_v51  ;;  %v982_v60 = vmul.f32 %v2712_v51, %v980_v57 }
 0xfc6   :  { %v965_v52 = vpop.permute.xlu0 %964 }
 0xfc7   :  { %v967_v28 = vmul.f32 %v2712_v51, %v965_v52 }
 0xfc9   :  { %969 = vrot.lane.b32.xlu1 %v967_v28, %s2961_s3 }
0x103b   :  { %v970_v53 = vpop.permute.xlu1 %969 }
0x103c   :  { %v972_v54 = vadd.f32 %v970_v53, %v3167_v43 }
0x103e   :  { %2713 = vtanh.f32 %v972_v54 }
0x104b   :  { %v2714_v55 = vpop.eup %2713 }
0x104c   :  { %976 = vrot.lane.b32.xlu0 %v2714_v55, %s2962_s5 }
0x10be   :  { %v977_v58 = vpop.permute.xlu0 %976 }
0x10bf   :  { %v979_v59 = vmul.f32 %v977_v58, %v974_v56  ;;  %v3348_v58 = vld [vmem:[%s3542_s10] ss:$0 sm:$0xff] }
0x10c1   :  { %v983_v61 = vadd.f32 %v982_v60, %v979_v59 }
0x10c3   :  { %v985_v62 = vrot.slane %v983_v61, 2  ;;  %v1086_v45 = vrot.slane %v983_v61, 6  ;;  %v1199_v23 = vsel %vm237_vm0, %v3257_v41, %v983_v61 }
0x10c5   :  { %986 = vrot.lane.b32.xlu1 %v985_v62, %s2962_s5 }
0x1137   :  { %v987_v63 = vpop.permute.xlu1 %986 }
0x1138   :  { %2537 = vmatmul.mubr.msk.f32.vlgmr.msra.gmra.mxu0 %vm146_vm3, %v987_v63  ;;  %v2315_v63 = vld [vmem:[#allocation11] ss:$0 sm:$0xff] }
0x1139   :  { %2551 = vmatpush3.msra.mxu0 %v1205_v26 }
0x113a   :  { %2552 = vmatprep.subr.mxu0 %v1204_v49 }
0x113b   :  { %2553 = vmatpush3.msra.mxu0 %v1204_v49 }
0x11f8   :  { %v1056_v0 = vpop.f32.mrf.mxu0 }
0x11f9   :  { %v1057_v1 = vadd.f32 %v3150_v37, %v1056_v0 }
0x11fa   :  { %v2538_v2 = vpop.f32.mrf.mxu0 }
0x11fb   :  { %v1061_v3 = vrot.slane %v1057_v1, 4 }
0x11fd   :  { %1070 = vrot.lane.b32.xlu0 %v1061_v3, %s2961_s3  ;;  %v1063_v4 = vadd.f32 %v1061_v3, %v3167_v43 }
0x11ff   :  { %v1064_v5 = vsub.f32 0.0, %v1063_v4 }
0x1201   :  { %v1065_v7 = vmul.f32 1.442695, %v1064_v5 }
0x1203   :  { %2715 = vpow2.f32 %v1065_v7 }
0x1210   :  { %v2716_v8 = vpop.eup %2715 }
0x1211   :  { %v1067_v9 = vadd.f32 1.0, %v2716_v8 }
0x1213   :  { %2717 = vrcp.f32 %v1067_v9 }
0x1220   :  { %v2718_v10 = vpop.eup %2717 }
0x1221   :  { %v1080_v18 = vsub.f32 1.0, %v2718_v10  ;;  %v1088_v20 = vmul.f32 %v2718_v10, %v1086_v45 }
0x126f   :  { %v1071_v11 = vpop.permute.xlu0 %1070 }
0x1270   :  { %v1073_v12 = vmul.f32 %v2718_v10, %v1071_v11 }
0x1272   :  { %1075 = vrot.lane.b32.xlu1 %v1073_v12, %s2961_s3 }
0x12e4   :  { %v1076_v13 = vpop.permute.xlu1 %1075 }
0x12e5   :  { %v1078_v15 = vadd.f32 %v1076_v13, %v3167_v43 }
0x12e7   :  { %2719 = vtanh.f32 %v1078_v15 }
0x12f4   :  { %v2720_v16 = vpop.eup %2719 }
0x12f5   :  { %1082 = vrot.lane.b32.xlu0 %v2720_v16, %s2962_s5 }
0x1367   :  { %v1083_v19 = vpop.permute.xlu0 %1082 }
0x1368   :  { %v1085_v21 = vmul.f32 %v1083_v19, %v1080_v18 }
0x136a   :  { %v3287_v22 = vadd.f32 %v1088_v20, %v1085_v21 }
0x136c   :  { %v1091_v25 = vrot.slane %v3287_v22, 4  ;;  %v3294_v29 = vsel %vm239_vm1, %v1199_v23, %v3287_v22  ;;  %v1192_v28 = vrot.slane %v3287_v22, 6 }
0x136e   :  { %1092 = vrot.lane.b32.xlu1 %v1091_v25, %s2962_s5 }
0x13e0   :  { %v1093_v30 = vpop.permute.xlu1 %1092 }
0x13e1   :  { %2548 = vmatmul.mubr.msk.f32.vlgmr.msra.gmra.mxu1 %vm146_vm3, %v1093_v30 }
0x13e2   :  { %2569 = vmatprep.mubr.msk.f32.mxu1 %vm2960_vm6, %v2959_v14  ;;  %2562 = vmatpush3.msra.mxu1 %v3308_v47 }
0x13e3   :  { %2563 = vmatprep.subr.mxu1 %v2959_v14 }
0x13e4   :  { %2564 = vmatpush3.msra.mxu1 %v3310_v48 }
0x13e5   :  { %2565 = vmatprep.subr.mxu1 %v2959_v14 }
0x13e6   :  { %2566 = vmatpush3.msra.mxu1 %v3314_v50 }
0x13e7   :  { %2567 = vmatprep.subr.mxu1 %v2959_v14 }
0x14a1   :  { %v1162_v31 = vpop.f32.mrf.mxu1 }
0x14a2   :  { %v1163_v32 = vadd.f32 %v3150_v37, %v1162_v31 }
0x14a3   :  { %v2549_v33 = vpop.f32.mrf.mxu1 }
0x14a4   :  { %v1167_v34 = vrot.slane %v1163_v32, 2 }
0x14a6   :  { %1176 = vrot.lane.b32.xlu0 %v1167_v34, %s2961_s3  ;;  %v1169_v35 = vadd.f32 %v1167_v34, %v3167_v43 }
0x14a8   :  { %v1170_v36 = vsub.f32 0.0, %v1169_v35 }
0x14aa   :  { %v1171_v38 = vmul.f32 1.442695, %v1170_v36 }
0x14ac   :  { %2721 = vpow2.f32 %v1171_v38 }
0x14b9   :  { %v2722_v39 = vpop.eup %2721 }
0x14ba   :  { %v1173_v40 = vadd.f32 1.0, %v2722_v39 }
0x14bc   :  { %2723 = vrcp.f32 %v1173_v40 }
0x14c9   :  { %v2724_v41 = vpop.eup %2723 }
0x14ca   :  { %v1186_v52 = vsub.f32 1.0, %v2724_v41  ;;  %v1194_v54 = vmul.f32 %v2724_v41, %v1192_v28 }
0x1518   :  { %v1177_v42 = vpop.permute.xlu0 %1176 }
0x1519   :  { %v1179_v44 = vmul.f32 %v2724_v41, %v1177_v42 }
0x151b   :  { %1181 = vrot.lane.b32.xlu1 %v1179_v44, %s2961_s3 }
0x151f   :  { %1220 = vrot.lane.b32.xlu1 %v3238_v17, %s2962_s5  ;;  %v3318_v17 = vld [vmem:[#allocation10] sm:$0xff] }
0x1520   :  { %2568 = vmatpush3.msra.mxu1 %v3318_v17 }
0x1521   :  { %2570 = vmatmul.mubr.msk.f32.vlgmr.msra.gmra.mxu1 %vm146_vm3, %v3085_v6  ;;  %2583 = vmatprep.subr.mxu1 %v2959_v14 }
0x1522   :  { %2584 = vmatpush3.msra.mxu1 %v3308_v47  ;;  %2591 = vmatprep.mubr.msk.f32.mxu1 %vm2960_vm6, %v2959_v14 }
0x1523   :  { %2585 = vmatprep.subr.mxu1 %v2959_v14 }
0x1524   :  { %2586 = vmatpush3.msra.mxu1 %v3310_v48 }
0x1525   :  { %2587 = vmatprep.subr.mxu1 %v2959_v14 }
0x1526   :  { %2588 = vmatpush3.msra.mxu1 %v3314_v50 }
0x1527   :  { %2589 = vmatprep.subr.mxu1 %v2959_v14 }
0x1528   :  { %2590 = vmatpush3.msra.mxu1 %v3318_v17 }
0x1529   :  { %2605 = vmatprep.subr.mxu1 %v2959_v14 }
0x158d   :  { %v1182_v37 = vpop.permute.xlu1 %1181 }
0x158e   :  { %v1184_v24 = vadd.f32 %v1182_v37, %v3167_v43  ;;  %v1203_v43 = vld [vmem:[#allocation8 + $0x8] sm:$0xff] }
0x158f   :  { %2554 = vmatprep.subr.mxu0 %v1203_v43 }
0x1590   :  { %2725 = vtanh.f32 %v1184_v24  ;;  %2555 = vmatpush3.msra.mxu0 %v1203_v43 }
0x1591   :  { %v1221_v46 = vpop.permute.xlu1 %1220  ;;  %2556 = vmatprep.subr.mxu0 %v1202_v27 }
0x1592   :  { %2558 = vmatprep.mubr.msk.f32.mxu0 %vm146_vm3, %v1221_v46  ;;  %2557 = vmatpush3.msra.mxu0 %v1202_v27 }
0x1593   :  { %2572 = vmatprep.subr.mxu0 %v2959_v14 }
0x159d   :  { %v2726_v51 = vpop.eup %2725 }
0x159e   :  { %1188 = vrot.lane.b32.xlu0 %v2726_v51, %s2962_s5 }
0x15e1   :  { %v1377_v59 = vpop.f32.mrf.mxu1 }
0x15e2   :  { %v1378_v60 = vadd.f32 %v3348_v58, %v1377_v59 }
0x15e3   :  { %v2571_v61 = vpop.f32.mrf.mxu1 }
0x15e4   :  { %1389 = vrot.lane.b32.xlu1 %v1378_v60, %s2961_s3 }
0x1610   :  { %v1189_v53 = vpop.permute.xlu0 %1188 }
0x1611   :  { %v1191_v55 = vmul.f32 %v1189_v53, %v1186_v52 }
0x1613   :  { %v3339_v56 = vadd.f32 %v1194_v54, %v1191_v55 }
0x1615   :  { %v1201_v57 = vsel %vm241_vm2, %v3294_v29, %v3339_v56 }
0x1616   :  { %1222 = vrot.lane.b32.xlu0 %v1201_v57, %s2962_s5 }
0x1656   :  { %v1390_v10 = vpop.permute.xlu1 %1389 }
0x1688   :  { %v1223_v62 = vpop.permute.xlu0 %1222 }
0x1689   :  { %2559 = vmatmul.mubr.msk.f32.vlgmr.msra.gmra.mxu0 %vm146_vm3, %v1223_v62 }
0x168a   :  { %2573 = vmatpush3.msra.mxu0 %v3308_v47  ;;  %2580 = vmatprep.mubr.msk.f32.mxu0 %vm2960_vm6, %v2959_v14 }
0x168b   :  { %2574 = vmatprep.subr.mxu0 %v2959_v14 }
0x168c   :  { %2575 = vmatpush3.msra.mxu0 %v3310_v48 }
0x168d   :  { %2576 = vmatprep.subr.mxu0 %v2959_v14 }
0x168e   :  { %2577 = vmatpush3.msra.mxu0 %v3314_v50 }
0x168f   :  { %2578 = vmatprep.subr.mxu0 %v2959_v14 }
0x1690   :  { %2579 = vmatpush3.msra.mxu0 %v3318_v17 }
0x1691   :  { %2594 = vmatprep.subr.mxu0 %v2959_v14 }
0x1749   :  { %v2560_v0 = vpop.f32.mrf.mxu0 }
0x174a   :  { %v3363_v1 = vadd.f32 %v2560_v0, %v2315_v63 }
0x174b   :  { %v1294_v2 = vpop.f32.mrf.mxu0 }
0x174c   :  { %v3365_v3 = vadd.f32 %v2315_v63, %v1294_v2 }
0x174e   :  { %v1381_v4 = vadd.f32 %v1378_v60, %v3365_v3 }
0x1750   :  { %v1382_v5 = vsub.f32 0.0, %v1381_v4 }
0x1752   :  { %v1383_v7 = vmul.f32 1.442695, %v1382_v5 }
0x1754   :  { %2727 = vpow2.f32 %v1383_v7 }
0x1761   :  { %v2728_v8 = vpop.eup %2727 }
0x1762   :  { %v1385_v9 = vadd.f32 1.0, %v2728_v8 }
0x1764   :  { %2729 = vrcp.f32 %v1385_v9 }
0x1771   :  { %v2730_v11 = vpop.eup %2729 }
0x1772   :  { %v1392_v12 = vmul.f32 %v2730_v11, %v1390_v10  ;;  %v1399_v45 = vsub.f32 1.0, %v2730_v11 }
0x1774   :  { %1394 = vrot.lane.b32.xlu0 %v1392_v12, %s2961_s3 }
0x1778   :  { %1405 = vrot.lane.b32.xlu0 %v3085_v6, %s2952_s27 }
0x17e6   :  { %v1395_v13 = vpop.permute.xlu0 %1394 }
0x17e7   :  { %v1397_v15 = vadd.f32 %v1395_v13, %v3365_v3 }
0x17e9   :  { %2731 = vtanh.f32 %v1397_v15 }
0x17ea   :  { %v1406_v18 = vpop.permute.xlu0 %1405 }
0x17eb   :  { %v1408_v20 = vmul.f32 %v2730_v11, %v1406_v18 }
0x17f6   :  { %v2732_v16 = vpop.eup %2731 }
0x17f7   :  { %1401 = vrot.lane.b32.xlu1 %v2732_v16, %s2962_s5 }
0x1869   :  { %v1402_v19 = vpop.permute.xlu1 %1401 }
0x186a   :  { %v1404_v21 = vmul.f32 %v1402_v19, %v1399_v45 }
0x186c   :  { %v3373_v22 = vadd.f32 %v1408_v20, %v1404_v21 }
0x186e   :  { %1411 = vrot.lane.b32.xlu1 %v3373_v22, %s2962_s5  ;;  %v1511_v37 = vrot.slane %v3373_v22, 6 }
0x18e0   :  { %v1412_v23 = vpop.permute.xlu1 %1411 }
0x18e1   :  { %2581 = vmatmul.mubr.msk.f32.vlgmr.msra.gmra.mxu0 %vm146_vm3, %v1412_v23 }
0x18e2   :  { %2595 = vmatpush3.msra.mxu0 %v3308_v47  ;;  %2602 = vmatprep.mubr.msk.f32.mxu0 %vm2960_vm6, %v2959_v14 }
0x18e3   :  { %2596 = vmatprep.subr.mxu0 %v2959_v14 }
0x18e4   :  { %2597 = vmatpush3.msra.mxu0 %v3310_v48 }
0x18e5   :  { %2598 = vmatprep.subr.mxu0 %v2959_v14 }
0x18e6   :  { %2599 = vmatpush3.msra.mxu0 %v3314_v50 }
0x18e7   :  { %2600 = vmatprep.subr.mxu0 %v2959_v14 }
0x18e8   :  { %2601 = vmatpush3.msra.mxu0 %v3318_v17 }
0x18e9   :  { %2616 = vmatprep.subr.mxu0 %v2959_v14 }
0x19a1   :  { %v1481_v6 = vpop.f32.mrf.mxu0 }
0x19a2   :  { %v1482_v25 = vadd.f32 %v3348_v58, %v1481_v6 }
0x19a3   :  { %v2582_v29 = vpop.f32.mrf.mxu0 }
0x19a4   :  { %v1486_v30 = vrot.slane %v1482_v25, 6 }
0x19a6   :  { %1495 = vrot.lane.b32.xlu0 %v1486_v30, %s2961_s3  ;;  %v1488_v31 = vadd.f32 %v1486_v30, %v3365_v3 }
0x19a8   :  { %v1489_v32 = vsub.f32 0.0, %v1488_v31 }
0x19aa   :  { %v1490_v33 = vmul.f32 1.442695, %v1489_v32 }
0x19ac   :  { %2733 = vpow2.f32 %v1490_v33 }
0x19b9   :  { %v2734_v34 = vpop.eup %2733 }
0x19ba   :  { %v1492_v35 = vadd.f32 1.0, %v2734_v34 }
0x19bc   :  { %2735 = vrcp.f32 %v1492_v35 }
0x19c9   :  { %v2736_v36 = vpop.eup %2735 }
0x19ca   :  { %v1505_v44 = vsub.f32 1.0, %v2736_v36  ;;  %v1513_v26 = vmul.f32 %v2736_v36, %v1511_v37 }
0x1a18   :  { %v1496_v38 = vpop.permute.xlu0 %1495 }
0x1a19   :  { %v1498_v39 = vmul.f32 %v2736_v36, %v1496_v38 }
0x1a1b   :  { %1500 = vrot.lane.b32.xlu1 %v1498_v39, %s2961_s3 }
0x1a8d   :  { %v1501_v40 = vpop.permute.xlu1 %1500 }
0x1a8e   :  { %v1503_v41 = vadd.f32 %v1501_v40, %v3365_v3 }
0x1a90   :  { %2737 = vtanh.f32 %v1503_v41 }
0x1a9d   :  { %v2738_v42 = vpop.eup %2737 }
0x1a9e   :  { %1507 = vrot.lane.b32.xlu0 %v2738_v42, %s2962_s5 }
0x1b10   :  { %v1508_v24 = vpop.permute.xlu0 %1507 }
0x1b11   :  { %v1510_v46 = vmul.f32 %v1508_v24, %v1505_v44 }
0x1b13   :  { %v1514_v49 = vadd.f32 %v1513_v26, %v1510_v46 }
0x1b15   :  { %v1516_v43 = vrot.slane %v1514_v49, 2  ;;  %v1617_v7 = vrot.slane %v1514_v49, 6  ;;  %v2147_v12 = vsel %vm237_vm0, %v3373_v22, %v1514_v49 }
0x1b17   :  { %1517 = vrot.lane.b32.xlu1 %v1516_v43, %s2962_s5 }
0x1b89   :  { %v1518_v27 = vpop.permute.xlu1 %1517 }
0x1b8a   :  { %2592 = vmatmul.mubr.msk.f32.vlgmr.msra.gmra.mxu1 %vm146_vm3, %v1518_v27 }
0x1b8b   :  { %2606 = vmatpush3.msra.mxu1 %v3308_v47  ;;  %2613 = vmatprep.mubr.msk.f32.mxu1 %vm2960_vm6, %v2959_v14 }
0x1b8c   :  { %2607 = vmatprep.subr.mxu1 %v2959_v14 }
0x1b8d   :  { %2608 = vmatpush3.msra.mxu1 %v3310_v48 }
0x1b8e   :  { %2609 = vmatprep.subr.mxu1 %v2959_v14 }
0x1b8f   :  { %2610 = vmatpush3.msra.mxu1 %v3314_v50 }
0x1b90   :  { %2611 = vmatprep.subr.mxu1 %v2959_v14 }
0x1b91   :  { %2612 = vmatpush3.msra.mxu1 %v3318_v17 }
0x1b92   :  { %2627 = vmatprep.subr.mxu1 %v2959_v14 }
0x1c4a   :  { %v1587_v51 = vpop.f32.mrf.mxu1 }
0x1c4b   :  { %v1588_v52 = vadd.f32 %v3348_v58, %v1587_v51 }
0x1c4c   :  { %v2593_v28 = vpop.f32.mrf.mxu1 }
0x1c4d   :  { %v1592_v53 = vrot.slane %v1588_v52, 4 }
0x1c4f   :  { %1601 = vrot.lane.b32.xlu0 %v1592_v53, %s2961_s3  ;;  %v1594_v54 = vadd.f32 %v1592_v53, %v3365_v3 }
0x1c51   :  { %v1595_v55 = vsub.f32 0.0, %v1594_v54 }
0x1c53   :  { %v1596_v57 = vmul.f32 1.442695, %v1595_v55 }
0x1c55   :  { %2739 = vpow2.f32 %v1596_v57 }
0x1c62   :  { %v2740_v59 = vpop.eup %2739 }
0x1c63   :  { %v1598_v60 = vadd.f32 1.0, %v2740_v59 }
0x1c65   :  { %2741 = vrcp.f32 %v1598_v60 }
0x1c72   :  { %v2742_v61 = vpop.eup %2741 }
0x1c73   :  { %v1611_v5 = vsub.f32 1.0, %v2742_v61  ;;  %v1619_v9 = vmul.f32 %v2742_v61, %v1617_v7 }
0x1cc1   :  { %v1602_v62 = vpop.permute.xlu0 %1601 }
0x1cc2   :  { %v1604_v63 = vmul.f32 %v2742_v61, %v1602_v62 }
0x1cc4   :  { %1606 = vrot.lane.b32.xlu1 %v1604_v63, %s2961_s3 }
0x1d36   :  { %v1607_v0 = vpop.permute.xlu1 %1606 }
0x1d37   :  { %v1609_v2 = vadd.f32 %v1607_v0, %v3365_v3 }
0x1d39   :  { %2743 = vtanh.f32 %v1609_v2 }
0x1d46   :  { %v2744_v4 = vpop.eup %2743 }
0x1d47   :  { %1613 = vrot.lane.b32.xlu0 %v2744_v4, %s2962_s5 }
0x1db9   :  { %v1614_v8 = vpop.permute.xlu0 %1613 }
0x1dba   :  { %v1616_v10 = vmul.f32 %v1614_v8, %v1611_v5 }
0x1dbc   :  { %v1620_v11 = vadd.f32 %v1619_v9, %v1616_v10 }
0x1dbe   :  { %v1622_v13 = vrot.slane %v1620_v11, 4  ;;  %v2148_v15 = vsel %vm239_vm1, %v2147_v12, %v1620_v11  ;;  %v1723_v36 = vrot.slane %v1620_v11, 6 }
0x1dc0   :  { %1623 = vrot.lane.b32.xlu1 %v1622_v13, %s2962_s5 }
0x1e32   :  { %v1624_v16 = vpop.permute.xlu1 %1623 }
0x1e33   :  { %2603 = vmatmul.mubr.msk.f32.vlgmr.msra.gmra.mxu0 %vm146_vm3, %v1624_v16 }
0x1e34   :  { %2617 = vmatpush3.msra.mxu0 %v3308_v47  ;;  %2624 = vmatprep.mubr.msk.f32.mxu0 %vm2960_vm6, %v2959_v14 }
0x1e35   :  { %2618 = vmatprep.subr.mxu0 %v2959_v14 }
0x1e36   :  { %2619 = vmatpush3.msra.mxu0 %v3310_v48 }
0x1e37   :  { %2620 = vmatprep.subr.mxu0 %v2959_v14 }
0x1e38   :  { %2621 = vmatpush3.msra.mxu0 %v3314_v50 }
0x1e39   :  { %2622 = vmatprep.subr.mxu0 %v2959_v14 }
0x1e3a   :  { %2623 = vmatpush3.msra.mxu0 %v3318_v17 }
0x1e3b   :  { %2638 = vmatprep.subr.mxu0 %v2959_v14 }
0x1ef3   :  { %v1693_v18 = vpop.f32.mrf.mxu0 }
0x1ef4   :  { %v1694_v45 = vadd.f32 %v3348_v58, %v1693_v18 }
0x1ef5   :  { %v2604_v19 = vpop.f32.mrf.mxu0 }
0x1ef6   :  { %v1698_v20 = vrot.slane %v1694_v45, 2 }
0x1ef8   :  { %1707 = vrot.lane.b32.xlu0 %v1698_v20, %s2961_s3  ;;  %v1700_v21 = vadd.f32 %v1698_v20, %v3365_v3 }
0x1efa   :  { %v1701_v22 = vsub.f32 0.0, %v1700_v21 }
0x1efc   :  { %v1702_v23 = vmul.f32 1.442695, %v1701_v22 }
0x1efe   :  { %2745 = vpow2.f32 %v1702_v23 }
0x1f0b   :  { %v2746_v6 = vpop.eup %2745 }
0x1f0c   :  { %v1704_v25 = vadd.f32 1.0, %v2746_v6 }
0x1f0e   :  { %2747 = vrcp.f32 %v1704_v25 }
0x1f1b   :  { %v2748_v29 = vpop.eup %2747 }
0x1f1c   :  { %v1717_v35 = vsub.f32 1.0, %v2748_v29  ;;  %v1725_v39 = vmul.f32 %v2748_v29, %v1723_v36 }
0x1f6a   :  { %v1708_v30 = vpop.permute.xlu0 %1707 }
0x1f6b   :  { %v1710_v31 = vmul.f32 %v2748_v29, %v1708_v30 }
0x1f6d   :  { %1712 = vrot.lane.b32.xlu1 %v1710_v31, %s2961_s3 }
0x1fdf   :  { %v1713_v32 = vpop.permute.xlu1 %1712 }
0x1fe0   :  { %v1715_v33 = vadd.f32 %v1713_v32, %v3365_v3 }
0x1fe2   :  { %2749 = vtanh.f32 %v1715_v33 }
0x1fef   :  { %v2750_v34 = vpop.eup %2749 }
0x1ff0   :  { %1719 = vrot.lane.b32.xlu0 %v2750_v34, %s2962_s5 }
0x2062   :  { %v1720_v38 = vpop.permute.xlu0 %1719 }
0x2063   :  { %v1722_v40 = vmul.f32 %v1720_v38, %v1717_v35 }
0x2065   :  { %v1726_v41 = vadd.f32 %v1725_v39, %v1722_v40 }
0x2067   :  { %v1728_v42 = vrot.slane %v1726_v41, 6  ;;  %v3435_v44 = vsel %vm241_vm2, %v2148_v15, %v1726_v41 }
0x2069   :  { %1729 = vrot.lane.b32.xlu1 %v1728_v42, %s2962_s5 }
0x20db   :  { %v1730_v37 = vpop.permute.xlu1 %1729 }
0x20dc   :  { %2614 = vmatmul.mubr.msk.f32.vlgmr.msra.gmra.mxu1 %vm146_vm3, %v1730_v37 }
0x20dd   :  { %2628 = vmatpush3.msra.mxu1 %v3308_v47  ;;  %2635 = vmatprep.mubr.msk.f32.mxu1 %vm2960_vm6, %v2959_v14 }
0x20de   :  { %2629 = vmatprep.subr.mxu1 %v2959_v14 }
0x20df   :  { %2630 = vmatpush3.msra.mxu1 %v3310_v48 }
0x20e0   :  { %2631 = vmatprep.subr.mxu1 %v2959_v14 }
0x20e1   :  { %2632 = vmatpush3.msra.mxu1 %v3314_v50 }
0x20e2   :  { %2633 = vmatprep.subr.mxu1 %v2959_v14 }
0x20e3   :  { %2634 = vmatpush3.msra.mxu1 %v3318_v17 }
0x219c   :  { %v1799_v3 = vpop.f32.mrf.mxu1 }
0x219d   :  { %v1800_v24 = vadd.f32 %v3348_v58, %v1799_v3 }
0x219e   :  { %v2615_v46 = vpop.f32.mrf.mxu1 }
0x219f   :  { %1811 = vrot.lane.b32.xlu0 %v1800_v24, %s2961_s3  ;;  %v1803_v26 = vadd.f32 %v1800_v24, %v3363_v1 }
0x21a1   :  { %v1804_v49 = vsub.f32 0.0, %v1803_v26 }
0x21a3   :  { %v1805_v43 = vmul.f32 1.442695, %v1804_v49 }
0x21a5   :  { %2751 = vpow2.f32 %v1805_v43 }
0x21b2   :  { %v2752_v27 = vpop.eup %2751 }
0x21b3   :  { %v1807_v51 = vadd.f32 1.0, %v2752_v27 }
0x21b5   :  { %2753 = vrcp.f32 %v1807_v51 }
0x21c2   :  { %v2754_v52 = vpop.eup %2753 }
0x21c3   :  { %v1821_v59 = vsub.f32 1.0, %v2754_v52  ;;  %v1828_v61 = vmul.f32 %v2754_v52, %v1728_v42 }
0x2211   :  { %v1812_v28 = vpop.permute.xlu0 %1811 }
0x2212   :  { %v1814_v53 = vmul.f32 %v2754_v52, %v1812_v28 }
0x2214   :  { %1816 = vrot.lane.b32.xlu1 %v1814_v53, %s2961_s3 }
0x2286   :  { %v1817_v54 = vpop.permute.xlu1 %1816 }
0x2287   :  { %v1819_v55 = vadd.f32 %v1817_v54, %v3363_v1 }
0x2289   :  { %2755 = vtanh.f32 %v1819_v55 }
0x2296   :  { %v2756_v57 = vpop.eup %2755 }
0x2297   :  { %1823 = vrot.lane.b32.xlu0 %v2756_v57, %s2962_s5 }
0x2309   :  { %v1824_v60 = vpop.permute.xlu0 %1823 }
0x230a   :  { %v1826_v62 = vmul.f32 %v1824_v60, %v1821_v59 }
0x230c   :  { %v3454_v63 = vadd.f32 %v1828_v61, %v1826_v62 }
0x230e   :  { %1831 = vrot.lane.b32.xlu1 %v3454_v63, %s2962_s5  ;;  %v1931_v16 = vrot.slane %v3454_v63, 6 }
0x2380   :  { %v1832_v0 = vpop.permute.xlu1 %1831 }
0x2381   :  { %2625 = vmatmul.mubr.msk.f32.vlgmr.msra.gmra.mxu0 %vm146_vm3, %v1832_v0 }
0x2382   :  { %2639 = vmatpush3.msra.mxu0 %v3308_v47  ;;  %2646 = vmatprep.mubr.msk.f32.mxu0 %vm2960_vm6, %v2959_v14 }
0x2383   :  { %2640 = vmatprep.subr.mxu0 %v2959_v14 }
0x2384   :  { %2641 = vmatpush3.msra.mxu0 %v3310_v48 }
0x2385   :  { %2642 = vmatprep.subr.mxu0 %v2959_v14 }
0x2386   :  { %2643 = vmatpush3.msra.mxu0 %v3314_v50 }
0x2387   :  { %2644 = vmatprep.subr.mxu0 %v2959_v14 }
0x2388   :  { %2645 = vmatpush3.msra.mxu0 %v3318_v17 }
0x2441   :  { %v1901_v2 = vpop.f32.mrf.mxu0 }
0x2442   :  { %v1902_v4 = vadd.f32 %v3348_v58, %v1901_v2 }
0x2443   :  { %v2626_v5 = vpop.f32.mrf.mxu0 }
0x2444   :  { %v1906_v47 = vrot.slane %v1902_v4, 6 }
0x2446   :  { %1915 = vrot.lane.b32.xlu0 %v1906_v47, %s2961_s3  ;;  %v1908_v7 = vadd.f32 %v1906_v47, %v3363_v1  ;;  %v2168_v47 = vld [vmem:[%s3543_s11 + $0x18] sm:$0xff] }
0x2447   :  { %2649 = vmatprep.subr.mxu1 %v2168_v47 }
0x2448   :  { %v1909_v8 = vsub.f32 0.0, %v1908_v7  ;;  %v2165_v7 = vld [vmem:[%s3543_s11] sm:$0xff] }
0x244a   :  { %v1910_v9 = vmul.f32 1.442695, %v1909_v8 }
0x244c   :  { %2757 = vpow2.f32 %v1910_v9 }
0x2459   :  { %v2758_v48 = vpop.eup %2757 }
0x245a   :  { %v1912_v10 = vadd.f32 1.0, %v2758_v48 }
0x245c   :  { %2759 = vrcp.f32 %v1912_v10 }
0x2469   :  { %v2760_v50 = vpop.eup %2759 }
0x246a   :  { %v1925_v15 = vsub.f32 1.0, %v2760_v50  ;;  %v1933_v19 = vmul.f32 %v2760_v50, %v1931_v16 }
0x24b8   :  { %v1916_v11 = vpop.permute.xlu0 %1915 }
0x24b9   :  { %v1918_v14 = vmul.f32 %v2760_v50, %v1916_v11 }
0x24bb   :  { %1920 = vrot.lane.b32.xlu1 %v1918_v14, %s2961_s3 }
0x252d   :  { %v1921_v17 = vpop.permute.xlu1 %1920 }
0x252e   :  { %v1923_v12 = vadd.f32 %v1921_v17, %v3363_v1 }
0x2530   :  { %2761 = vtanh.f32 %v1923_v12 }
0x253d   :  { %v2762_v13 = vpop.eup %2761 }
0x253e   :  { %1927 = vrot.lane.b32.xlu0 %v2762_v13, %s2962_s5 }
0x25b0   :  { %v1928_v18 = vpop.permute.xlu0 %1927 }
0x25b1   :  { %v1930_v45 = vmul.f32 %v1928_v18, %v1925_v15 }
0x25b3   :  { %v1934_v20 = vadd.f32 %v1933_v19, %v1930_v45 }
0x25b5   :  { %v1936_v21 = vrot.slane %v1934_v20, 2  ;;  %v2037_v37 = vrot.slane %v1934_v20, 6  ;;  %v2150_v49 = vsel %vm237_vm0, %v3454_v63, %v1934_v20 }
0x25b7   :  { %1937 = vrot.lane.b32.xlu1 %v1936_v21, %s2962_s5 }
0x2629   :  { %v1938_v22 = vpop.permute.xlu1 %1937 }
0x262a   :  { %2636 = vmatmul.mubr.msk.f32.vlgmr.msra.gmra.mxu1 %vm146_vm3, %v1938_v22 }
0x262b   :  { %2650 = vmatpush3.msra.mxu1 %v2168_v47 }
0x26ea   :  { %v2007_v23 = vpop.f32.mrf.mxu1 }
0x26eb   :  { %v2008_v6 = vadd.f32 %v3348_v58, %v2007_v23 }
0x26ec   :  { %v2637_v25 = vpop.f32.mrf.mxu1 }
0x26ed   :  { %v2012_v29 = vrot.slane %v2008_v6, 4 }
0x26ef   :  { %2021 = vrot.lane.b32.xlu0 %v2012_v29, %s2961_s3  ;;  %v2014_v30 = vadd.f32 %v2012_v29, %v3363_v1 }
0x26f1   :  { %v2015_v31 = vsub.f32 0.0, %v2014_v30 }
0x26f3   :  { %v2016_v32 = vmul.f32 1.442695, %v2015_v31 }
0x26f5   :  { %2763 = vpow2.f32 %v2016_v32 }
0x2702   :  { %v2764_v33 = vpop.eup %2763 }
0x2703   :  { %v2018_v34 = vadd.f32 1.0, %v2764_v33 }
0x2705   :  { %2765 = vrcp.f32 %v2018_v34 }
0x2712   :  { %v2766_v35 = vpop.eup %2765 }
0x2713   :  { %v2031_v42 = vsub.f32 1.0, %v2766_v35  ;;  %v2039_v24 = vmul.f32 %v2766_v35, %v2037_v37 }
0x2761   :  { %v2022_v36 = vpop.permute.xlu0 %2021 }
0x2762   :  { %v2024_v38 = vmul.f32 %v2766_v35, %v2022_v36 }
0x2764   :  { %2026 = vrot.lane.b32.xlu1 %v2024_v38, %s2961_s3 }
0x27d6   :  { %v2027_v39 = vpop.permute.xlu1 %2026 }
0x27d7   :  { %v2029_v40 = vadd.f32 %v2027_v39, %v3363_v1 }
0x27d9   :  { %2767 = vtanh.f32 %v2029_v40 }
0x27e6   :  { %v2768_v41 = vpop.eup %2767 }
0x27e7   :  { %2033 = vrot.lane.b32.xlu0 %v2768_v41, %s2962_s5 }
0x2859   :  { %v2034_v3 = vpop.permute.xlu0 %2033 }
0x285a   :  { %v2036_v46 = vmul.f32 %v2034_v3, %v2031_v42 }
0x285c   :  { %v2040_v26 = vadd.f32 %v2039_v24, %v2036_v46 }
0x285e   :  { %v2042_v43 = vrot.slane %v2040_v26, 4  ;;  %v2151_v27 = vsel %vm239_vm1, %v2150_v49, %v2040_v26  ;;  %v2143_v9 = vrot.slane %v2040_v26, 6 }
0x2860   :  { %2043 = vrot.lane.b32.xlu1 %v2042_v43, %s2962_s5 }
0x28d2   :  { %v2044_v51 = vpop.permute.xlu1 %2043 }
0x28d3   :  { %2647 = vmatmul.mubr.msk.f32.vlgmr.msra.gmra.mxu0 %vm146_vm3, %v2044_v51 }
0x2993   :  { %v2113_v52 = vpop.f32.mrf.mxu0 }
0x2994   :  { %v2114_v28 = vadd.f32 %v3348_v58, %v2113_v52 }
0x2995   :  { %v2648_v53 = vpop.f32.mrf.mxu0 }
0x2996   :  { %v2118_v54 = vrot.slane %v2114_v28, 2 }
0x2998   :  { %2127 = vrot.lane.b32.xlu0 %v2118_v54, %s2961_s3  ;;  %v2120_v55 = vadd.f32 %v2118_v54, %v3363_v1 }
0x299a   :  { %v2121_v57 = vsub.f32 0.0, %v2120_v55 }
0x299c   :  { %v2122_v59 = vmul.f32 1.442695, %v2121_v57 }
0x299e   :  { %2769 = vpow2.f32 %v2122_v59 }
0x29ab   :  { %v2770_v60 = vpop.eup %2769 }
0x29ac   :  { %v2124_v61 = vadd.f32 1.0, %v2770_v60 }
0x29ae   :  { %2771 = vrcp.f32 %v2124_v61 }
0x29bb   :  { %v2772_v62 = vpop.eup %2771 }
0x29bc   :  { %v2137_v8 = vsub.f32 1.0, %v2772_v62  ;;  %v2145_v10 = vmul.f32 %v2772_v62, %v2143_v9 }
0x2a0a   :  { %v2128_v63 = vpop.permute.xlu0 %2127 }
0x2a0b   :  { %v2130_v0 = vmul.f32 %v2772_v62, %v2128_v63 }
0x2a0d   :  { %2132 = vrot.lane.b32.xlu1 %v2130_v0, %s2961_s3 }
0x2a11   :  { %2178 = vrot.lane.b32.xlu1 %v3435_v44, %s2962_s5  ;;  %v2167_v44 = vld [vmem:[%s3543_s11 + $0x10] sm:$0xff] }
0x2a12   :  { %2651 = vmatprep.subr.mxu1 %v2167_v44 }
0x2a13   :  { %2652 = vmatpush3.msra.mxu1 %v2167_v44 }
0x2a15   :  { %2154 = vrot.lane.b32.xlu1 %v3339_v56, %s2962_s5  ;;  %v2166_v56 = vld [vmem:[%s3543_s11 + $0x8] sm:$0xff]  ;;  %s2963_s11 = smov [#allocation14]  }
0x2a16   :  { %2653 = vmatprep.subr.mxu1 %v2166_v56  ;;  %s2280_s29 = sshll.u32 %s2963_s11, 4  ;;  %s2281_s29 = int_to_ptr.vmem [resolvable:$true] %s2280_s29 }
0x2a17   :  { %2654 = vmatpush3.msra.mxu1 %v2166_v56  ;;  %s2895_s6 = scalar_lea.vmem %s2281_s29, 64  ;;  %p2900_p3 = scmp.lt.s32.totalorder %s2281_s29, %s2281_s29 }
0x2a18   :  { %2655 = vmatprep.subr.mxu1 %v2165_v7  ;;  %p2896_p2 = scmp.ne.s32.totalorder %s2281_s29, %s2895_s6  ;;  %p2901_p4 = scmp.lt.s32.totalorder %s2895_s6, %s2895_s6 }
0x2a19   :  { %2656 = vmatpush3.msra.mxu1 %v2165_v7 }
0x2a1a   :  { %p2902_p5 = por %p2901_p4, %p2900_p3 }
0x2a1c   :  { %p2903_p6 = pnand %p2902_p5, %p2896_p2 }
0x2a7f   :  { %v2133_v58 = vpop.permute.xlu1 %2132 }
0x2a80   :  { %v2135_v2 = vadd.f32 %v2133_v58, %v3363_v1 }
0x2a82   :  { %2773 = vtanh.f32 %v2135_v2 }
0x2a83   :  { %v2179_v4 = vpop.permute.xlu1 %2178 }
0x2a84   :  { %2657 = vmatprep.mubr.msk.f32.mxu1 %vm146_vm3, %v2179_v4 }
0x2a87   :  { %v2155_v5 = vpop.permute.xlu1 %2154 }
0x2a88   :  { %2158 = vst.msk [vmem:[#allocation14 - $0x6] sm:$0xc0] %vm2157_vm9, %v2155_v5 }
0x2a8f   :  { %v2774_v1 = vpop.eup %2773 }
0x2a90   :  { %2139 = vrot.lane.b32.xlu0 %v2774_v1, %s2962_s5 }
0x2b02   :  { %v2140_v48 = vpop.permute.xlu0 %2139 }
0x2b03   :  { %v2142_v50 = vmul.f32 %v2140_v48, %v2137_v8 }
0x2b05   :  { %v2146_v11 = vadd.f32 %v2145_v10, %v2142_v50 }
0x2b07   :  { %v2152_v14 = vsel %vm241_vm2, %v2151_v27, %v2146_v11 }
0x2b08   :  { %2180 = vrot.lane.b32.xlu0 %v2152_v14, %s2962_s5 }
0x2b0c   :  { %2160 = vrot.lane.b32.xlu0 %v2146_v11, %s2962_s5 }
0x2b7a   :  { %v2181_v17 = vpop.permute.xlu0 %2180 }
0x2b7b   :  { %2658 = vmatmul.mubr.msk.f32.vlgmr.msra.gmra.mxu1 %vm146_vm3, %v2181_v17 }
0x2b7e   :  { %v2161_v12 = vpop.permute.xlu0 %2160 }
0x2b7f   :  { %2164 = vst.msk [vmem:[#allocation14 - $0x4] sm:$0xc0] %vm2157_vm9, %v2161_v12 }
0x2b80   :  { %2906 = shalt.err (!%p2903_p6)
}
0x2b81   :  { %2286 = dma.vmem_to_hbm [thread:$0]  %s2281_s29, 64, %s3546_s14, [#allocation15], %s2952_s27, %s2952_s27, %s2953_s28  }
0x2b82   :  { %v2327_v13 = vld [vmem:[%s3544_s12] ss:$0 sm:$0xff]  ;;  %s2964_s7 = smov [#allocation13]  }
0x2b83   :  { %s2268_s19 = sshll.u32 %s2964_s7, 4  ;;  %s2269_s19 = int_to_ptr.vmem [resolvable:$true] %s2268_s19 }
0x2b84   :  { %s2915_s9 = scalar_lea.vmem %s2269_s19, 256  ;;  %p2920_p8 = scmp.lt.s32.totalorder %s2269_s19, %s2269_s19 }
0x2b85   :  { %p2916_p7 = scmp.ne.s32.totalorder %s2269_s19, %s2915_s9  ;;  %p2921_p9 = scmp.lt.s32.totalorder %s2915_s9, %s2915_s9 }
0x2b87   :  { %p2922_p10 = por %p2921_p9, %p2920_p8 }
0x2b89   :  { %p2923_p11 = pnand %p2922_p10, %p2916_p7 }
0x2c3b   :  { %v2659_v15 = vpop.f32.mrf.mxu1 }
0x2c3c   :  { %v2258_v16 = vadd.f32 %v2659_v15, %v2327_v13 }
0x2c3d   :  { %v2252_v18 = vpop.f32.mrf.mxu1 }
0x2c3e   :  { %2262 = vst [vmem:[#allocation13 + $0x8] sm:$0xff] %v2258_v16  ;;  %v2253_v45 = vadd.f32 %v2327_v13, %v2252_v18 }
0x2c40   :  { %2261 = vst [vmem:[#allocation13] sm:$0xff] %v2253_v45 }
0x2c41   :  { %2926 = shalt.err (!%p2923_p11)
}
0x2c42   :  { %2274 = dma.vmem_to_hbm [thread:$0]  %s2269_s19, 256, %s3545_s13, [#allocation4], %s2948_s16, %s2948_s16, %s2949_s17  }
0x2c43   :  { %2943 = dma.done.wait [#allocation4], 256  }
0x2c44   :  { %2944 = vsyncadd [#allocation4], 4294967040 }
0x2c45   :  { %2945 = dma.done.wait [#allocation15], 64  }
0x2c46   :  { %2946 = vsyncadd [#allocation15], 4294967232 }
0x2c47   :  { %2293 = vsyncpa [#allocation3], 1 }
0x2c48   :  { %2294 = vsyncpa [#allocation6], 1 }
0x2c49   :  { %2295 = vsyncpa [#allocation9], 1 }
0x2c4a   :  { %2296 = vsyncpa [#allocation12], 1 }
0x2c4b   :  { %2297 = vsyncpa [#allocation4], 1 }
0x2c4c   :  { %2298 = vsyncpa [#allocation15], 1 }

</bundles_post_ra>
